<compile_context>
chip_gen: v7x
topology: tpu7x:2x2x1
jax: 0.10.0
libtpu: 0.0.40
codegen_flags: <defaults>
</compile_context>

<pallas_src>
import functools

import jax
import jax.numpy as jnp
from jax.experimental import pallas as pl
from jax.experimental.pallas import tpu as pltpu

SOS_TOKEN = 0


def _decoder_kernel(win_ref, whh_ref, bhn_ref, wout_ref, bout_ref, h0_ref,
                    out_ref, *, hidden_size, vocab_size, tgt_len):
    """Single-invocation greedy GRU decoder.

    win_ref : (V+1, 3H)  [embedding @ w_ih ; folded biases] — row V is the bias
                         row hit by the constant-1 lane of the one-hot token:
                         cols [0:2H] = b_ih_rz + b_hh_rz, cols [2H:3H] = b_ih_n.
    whh_ref : (H, 3H)    hidden->gates weights (r|z|n).
    bhn_ref : (1, H)     b_hh n-slice (scaled by r in-kernel, cannot be folded).
    wout_ref: (H, Vp)    output projection, vocab padded to lane width (pad cols 0).
    bout_ref: (1, Vp)    output bias, pad entries = -1e30.
    h0_ref  : (Bp, H)    initial hidden state (batch padded to 8 sublanes).
    out_ref : (T, Bp, Vp) logits, time-major so each step is a full-tile store.
    """
    H = hidden_size
    V = vocab_size
    Bp = h0_ref.shape[0]
    Vp = wout_ref.shape[-1]
    Ve = win_ref.shape[0]          # V + 1 (extra constant-1 bias lane)

    col_ve = jax.lax.broadcasted_iota(jnp.int32, (Bp, Ve), 1)   # one-hot helper
    col_vp = jax.lax.broadcasted_iota(jnp.int32, (Bp, Vp), 1)   # argmax helper
    ones_lane = col_ve == V                                     # constant bias lane

    # decoder_input = SOS token (index 0) -> one-hot column 0 (+ bias lane)
    tok0 = ((col_ve == SOS_TOKEN) | ones_lane).astype(jnp.float32)   # (Bp, Ve)
    h0 = h0_ref[...]                                                 # (Bp, H)

    def step(t, carry):
        h, tok = carry

        # Two MXU matmuls straight from the refs (no concat, no hoisted weights).
        gi = jnp.dot(tok, win_ref[...], preferred_element_type=jnp.float32)  # (Bp,3H)
        gh = jnp.dot(h, whh_ref[...], preferred_element_type=jnp.float32)    # (Bp,3H)

        # torch.nn.GRU gate math (gate order r, z, n); b_ih and b_hh_rz are
        # already inside gi via the bias lane.
        rz = jax.nn.sigmoid(gi[:, :2 * H] + gh[:, :2 * H])
        r = rz[:, :H]
        z = rz[:, H:]
        n = jnp.tanh(gi[:, 2 * H:] + r * (gh[:, 2 * H:] + bhn_ref[...]))
        h_new = (1.0 - z) * n + z * h

        # Output projection -> lane-dense (Bp, Vp) logits; full-tile store.
        logits = jnp.dot(h_new, wout_ref[...],
                         preferred_element_type=jnp.float32) + bout_ref[...]
        out_ref[t] = logits

        # Greedy argmax feedback (first-max index, like torch.argmax); padded
        # vocab columns carry -1e30 so they are never selected.
        mx = jnp.max(logits, axis=-1, keepdims=True)
        first_idx = jnp.min(jnp.where(logits == mx, col_vp, Vp),
                            axis=-1, keepdims=True)
        tok_new = ((col_ve == first_idx) | ones_lane).astype(jnp.float32)
        return (h_new, tok_new)

    jax.lax.fori_loop(0, tgt_len, step, (h0, tok0), unroll=True)


def decoder_forward(params, encoder_hidden, tgt_len):
    """Greedy decode.  encoder_hidden: (1, B, H).  Returns logits (B, tgt_len, V)."""
    emb = params["embedding"]          # (V, E)
    w_ih = params["w_ih_t"]            # (E, 3H)
    w_hh = params["w_hh_t"]            # (H, 3H)
    b_ih = params["b_ih"]              # (1, 3H)
    b_hh = params["b_hh"]              # (1, 3H)
    w_out = params["w_out_t"]          # (H, V)
    b_out = params["b_out"]            # (1, V)

    V, _E = emb.shape
    H = w_hh.shape[0]
    h0 = encoder_hidden[0]             # (B, H)
    B = h0.shape[0]

    # --- fold embedding into GRU input weights (exact for one-hot inputs) ---
    w_in = (emb @ w_ih).astype(jnp.float32)                      # (V, 3H)

    # --- extra bias row hit by the constant-1 lane of the one-hot token ---
    w_in_ext = jnp.zeros((V + 1, 3 * H), jnp.float32)
    w_in_ext = w_in_ext.at[:V, :].set(w_in)
    w_in_ext = w_in_ext.at[V, :2 * H].set(b_ih[0, :2 * H] + b_hh[0, :2 * H])
    w_in_ext = w_in_ext.at[V, 2 * H:].set(b_ih[0, 2 * H:])
    b_hn = b_hh[:, 2 * H:]                                       # (1, H)

    # --- lane-dense output: pad vocab dim to a multiple of 128 ---
    LANE = 128
    Vp = ((V + LANE - 1) // LANE) * LANE
    w_out_p = jnp.zeros((H, Vp), jnp.float32).at[:, :V].set(w_out)
    b_out_p = jnp.full((1, Vp), -1e30, jnp.float32).at[:, :V].set(b_out)

    # --- sublane fill: pad batch to a multiple of 8 ---
    SUB = 8
    Bp = ((B + SUB - 1) // SUB) * SUB
    h0_p = jnp.zeros((Bp, H), jnp.float32).at[:B].set(h0)

    kernel = functools.partial(_decoder_kernel, hidden_size=H,
                               vocab_size=V, tgt_len=tgt_len)

    vmem_spec = pl.BlockSpec(memory_space=pltpu.MemorySpace.VMEM)
    out_p = pl.pallas_call(
        kernel,
        out_shape=jax.ShapeDtypeStruct((tgt_len, Bp, Vp), jnp.float32),
        in_specs=[vmem_spec] * 6,
        out_specs=vmem_spec,
    )(w_in_ext, w_hh, b_hn, w_out_p, b_out_p, h0_p)

    # (T, Bp, Vp) -> (B, T, V)
    return jnp.transpose(out_p, (1, 0, 2))[:B, :, :V]


def decoder_forward_ref(params, encoder_hidden, tgt_len):
    """Pure-JAX reference matching the PyTorch forward (target_tensor=None)."""
    emb = params["embedding"]
    w_ih = params["w_ih_t"]
    w_hh = params["w_hh_t"]
    b_ih = params["b_ih"][0]
    b_hh = params["b_hh"][0]
    w_out = params["w_out_t"]
    b_out = params["b_out"][0]
    H = w_hh.shape[0]
    B = encoder_hidden.shape[1]

    h = encoder_hidden[0]
    tok = jnp.full((B,), SOS_TOKEN, dtype=jnp.int32)
    outs = []
    for _ in range(tgt_len):
        x = emb[tok]                                  # (B, E) embedding lookup
        gi = x @ w_ih + b_ih
        gh = h @ w_hh + b_hh
        r = jax.nn.sigmoid(gi[:, :H] + gh[:, :H])
        z = jax.nn.sigmoid(gi[:, H:2 * H] + gh[:, H:2 * H])
        n = jnp.tanh(gi[:, 2 * H:] + r * gh[:, 2 * H:])
        h = (1.0 - z) * n + z * h
        logits = h @ w_out + b_out
        outs.append(logits)
        tok = jnp.argmax(logits, axis=-1).astype(jnp.int32)
    return jnp.stack(outs, axis=1)                    # (B, tgt_len, V)


def make_params(key, vocab_size, embed_size, hidden_size):
    ks = jax.random.split(key, 7)
    s = 0.5
    return {
        "embedding": s * jax.random.normal(ks[0], (vocab_size, embed_size), jnp.float32),
        "w_ih_t":    s * jax.random.normal(ks[1], (embed_size, 3 * hidden_size), jnp.float32),
        "w_hh_t":    s * jax.random.normal(ks[2], (hidden_size, 3 * hidden_size), jnp.float32),
        "b_ih":      s * jax.random.normal(ks[3], (1, 3 * hidden_size), jnp.float32),
        "b_hh":      s * jax.random.normal(ks[4], (1, 3 * hidden_size), jnp.float32),
        "w_out_t":   s * jax.random.normal(ks[5], (hidden_size, vocab_size), jnp.float32),
        "b_out":     s * jax.random.normal(ks[6], (1, vocab_size), jnp.float32),
    }


if __name__ == "__main__":
    # Small shapes consistent with the module's forward signature.
    batch = 4
    src_len = 6
    vocab_size = 32
    embed_size = 16
    hidden_size = 32
    tgt_len = 8          # max_length path (target_tensor=None)

    key = jax.random.PRNGKey(0)
    kp, ke, kh = jax.random.split(key, 3)

    params = make_params(kp, vocab_size, embed_size, hidden_size)

    # encoder_outputs is accepted by forward() but never used by forward_1_step.
    encoder_outputs = jax.random.normal(ke, (batch, src_len, hidden_size), jnp.float32)
    encoder_hidden = jax.random.normal(kh, (1, batch, hidden_size), jnp.float32)

    out = decoder_forward(params, encoder_hidden, tgt_len)
    out = jax.block_until_ready(out)

    ref = decoder_forward_ref(params, encoder_hidden, tgt_len)
    assert out.shape == (batch, tgt_len, vocab_size)
    assert jnp.allclose(out, ref, atol=1e-4, rtol=1e-4), "mismatch vs reference"

    print("KERNEL_OK")
</pallas_src>

<mosaic_0001>
module attributes {stable_mosaic.version = 11 : i64} {
  func.func @_decoder_kernel(%arg0: memref<33x96xf32, #tpu.memory_space<vmem>>, %arg1: memref<32x96xf32, #tpu.memory_space<vmem>>, %arg2: memref<1x32xf32, #tpu.memory_space<vmem>>, %arg3: memref<32x128xf32, #tpu.memory_space<vmem>>, %arg4: memref<1x128xf32, #tpu.memory_space<vmem>>, %arg5: memref<8x32xf32, #tpu.memory_space<vmem>>, %arg6: memref<8x8x128xf32, #tpu.memory_space<vmem>>) attributes {dimension_semantics = [], scalar_prefetch = 0 : i64, scratch_operands = 0 : i64, tpu.core_type = #tpu.core_type<tc>} {
    %0 = tpu.iota {dimensions = array<i32: 1>} : vector<8x33xi32>
    %1 = tpu.iota {dimensions = array<i32: 1>} : vector<8x128xi32>
    %c32_i32 = arith.constant 32 : i32
    %2 = vector.broadcast %c32_i32 : i32 to vector<8x33xi32>
    %3 = arith.cmpi eq, %0, %2 : vector<8x33xi32>
    %c0_i32 = arith.constant 0 : i32
    %4 = vector.broadcast %c0_i32 : i32 to vector<8x33xi32>
    %5 = arith.cmpi eq, %0, %4 : vector<8x33xi32>
    %6 = arith.ori %5, %3 : vector<8x33xi1>
    %7 = arith.extui %6 : vector<8x33xi1> to vector<8x33xi32>
    %8 = arith.sitofp %7 : vector<8x33xi32> to vector<8x33xf32>
    %c0 = arith.constant 0 : index
    %c0_0 = arith.constant 0 : index
    %9 = vector.load %arg5[%c0, %c0_0] : memref<8x32xf32, #tpu.memory_space<vmem>>, vector<8x32xf32>
    %c0_i32_1 = arith.constant 0 : i32
    %c0_2 = arith.constant 0 : index
    %c0_3 = arith.constant 0 : index
    %10 = vector.load %arg0[%c0_2, %c0_3] : memref<33x96xf32, #tpu.memory_space<vmem>>, vector<33x96xf32>
    %cst = arith.constant dense<0.000000e+00> : vector<8x96xf32>
    %11 = tpu.matmul %8, %10, %cst {dimension_numbers = #tpu.dot_dimension_numbers<[1], [0], [0], [1], [0, 0, 1, 1], [], []>} : vector<8x33xf32>, vector<33x96xf32>, vector<8x96xf32> -> vector<8x96xf32>
    %c0_4 = arith.constant 0 : index
    %c0_5 = arith.constant 0 : index
    %12 = vector.load %arg1[%c0_4, %c0_5] : memref<32x96xf32, #tpu.memory_space<vmem>>, vector<32x96xf32>
    %cst_6 = arith.constant dense<0.000000e+00> : vector<8x96xf32>
    %13 = tpu.matmul %9, %12, %cst_6 {dimension_numbers = #tpu.dot_dimension_numbers<[1], [0], [0], [1], [0, 0, 1, 1], [], []>} : vector<8x32xf32>, vector<32x96xf32>, vector<8x96xf32> -> vector<8x96xf32>
    %14 = vector.extract_strided_slice %11 {offsets = [0, 0], sizes = [8, 64], strides = [1, 1]} : vector<8x96xf32> to vector<8x64xf32>
    %15 = vector.extract_strided_slice %13 {offsets = [0, 0], sizes = [8, 64], strides = [1, 1]} : vector<8x96xf32> to vector<8x64xf32>
    %16 = arith.addf %14, %15 : vector<8x64xf32>
    %17 = arith.negf %16 : vector<8x64xf32>
    %18 = math.exp %17 : vector<8x64xf32>
    %cst_7 = arith.constant 1.000000e+00 : f32
    %19 = vector.broadcast %cst_7 : f32 to vector<8x64xf32>
    %20 = arith.addf %19, %18 : vector<8x64xf32>
    %21 = arith.divf %19, %20 : vector<8x64xf32>
    %22 = vector.extract_strided_slice %21 {offsets = [0, 0], sizes = [8, 32], strides = [1, 1]} : vector<8x64xf32> to vector<8x32xf32>
    %23 = vector.extract_strided_slice %21 {offsets = [0, 32], sizes = [8, 32], strides = [1, 1]} : vector<8x64xf32> to vector<8x32xf32>
    %24 = vector.extract_strided_slice %11 {offsets = [0, 64], sizes = [8, 32], strides = [1, 1]} : vector<8x96xf32> to vector<8x32xf32>
    %25 = vector.extract_strided_slice %13 {offsets = [0, 64], sizes = [8, 32], strides = [1, 1]} : vector<8x96xf32> to vector<8x32xf32>
    %c0_8 = arith.constant 0 : index
    %c0_9 = arith.constant 0 : index
    %26 = vector.load %arg2[%c0_8, %c0_9] : memref<1x32xf32, #tpu.memory_space<vmem>>, vector<1x32xf32>
    %27 = vector.broadcast %26 : vector<1x32xf32> to vector<8x32xf32>
    %28 = arith.addf %25, %27 : vector<8x32xf32>
    %29 = arith.mulf %22, %28 : vector<8x32xf32>
    %30 = arith.addf %24, %29 : vector<8x32xf32>
    %31 = math.tanh %30 : vector<8x32xf32>
    %cst_10 = arith.constant 1.000000e+00 : f32
    %32 = vector.broadcast %cst_10 : f32 to vector<8x32xf32>
    %33 = arith.subf %32, %23 : vector<8x32xf32>
    %34 = arith.mulf %33, %31 : vector<8x32xf32>
    %35 = arith.mulf %23, %9 : vector<8x32xf32>
    %36 = arith.addf %34, %35 : vector<8x32xf32>
    %c0_11 = arith.constant 0 : index
    %c0_12 = arith.constant 0 : index
    %37 = vector.load %arg3[%c0_11, %c0_12] : memref<32x128xf32, #tpu.memory_space<vmem>>, vector<32x128xf32>
    %cst_13 = arith.constant dense<0.000000e+00> : vector<8x128xf32>
    %38 = tpu.matmul %36, %37, %cst_13 {dimension_numbers = #tpu.dot_dimension_numbers<[1], [0], [0], [1], [0, 0, 1, 1], [], []>} : vector<8x32xf32>, vector<32x128xf32>, vector<8x128xf32> -> vector<8x128xf32>
    %c0_14 = arith.constant 0 : index
    %c0_15 = arith.constant 0 : index
    %39 = vector.load %arg4[%c0_14, %c0_15] : memref<1x128xf32, #tpu.memory_space<vmem>>, vector<1x128xf32>
    %40 = vector.broadcast %39 : vector<1x128xf32> to vector<8x128xf32>
    %41 = arith.addf %38, %40 : vector<8x128xf32>
    %42 = arith.index_cast %c0_i32_1 : i32 to index
    %c0_16 = arith.constant 0 : index
    %c0_17 = arith.constant 0 : index
    %43 = vector.load %arg6[%42, %c0_16, %c0_17] : memref<8x8x128xf32, #tpu.memory_space<vmem>>, vector<1x8x128xf32>
    %44 = vector.shape_cast %43 : vector<1x8x128xf32> to vector<8x128xf32>
    %45 = vector.shape_cast %41 : vector<8x128xf32> to vector<1x8x128xf32>
    tpu.vector_store %arg6[%42, %c0_16, %c0_17], %45 {strides = array<i32>} : memref<8x8x128xf32, #tpu.memory_space<vmem>>, vector<1x8x128xf32>,
    %cst_18 = arith.constant dense<0xFF800000> : vector<8xf32>
    %46 = vector.multi_reduction <maximumf>, %41, %cst_18 [1] : vector<8x128xf32> to vector<8xf32>
    %47 = vector.shape_cast %46 : vector<8xf32> to vector<8x1xf32>
    %48 = vector.broadcast %47 : vector<8x1xf32> to vector<8x128xf32>
    %49 = arith.cmpf oeq, %41, %48 : vector<8x128xf32>
    %c128_i32 = arith.constant 128 : i32
    %50 = vector.broadcast %c128_i32 : i32 to vector<8x128xi32>
    %51 = arith.select %49, %1, %50 : vector<8x128xi1>, vector<8x128xi32>
    %cst_19 = arith.constant dense<2147483647> : vector<8xi32>
    %52 = vector.multi_reduction <minsi>, %51, %cst_19 [1] : vector<8x128xi32> to vector<8xi32>
    %53 = vector.shape_cast %52 : vector<8xi32> to vector<8x1xi32>
    %54 = vector.broadcast %53 : vector<8x1xi32> to vector<8x33xi32>
    %55 = arith.cmpi eq, %0, %54 : vector<8x33xi32>
    %56 = arith.ori %55, %3 : vector<8x33xi1>
    %57 = arith.extui %56 : vector<8x33xi1> to vector<8x33xi32>
    %58 = arith.sitofp %57 : vector<8x33xi32> to vector<8x33xf32>
    %c1_i32 = arith.constant 1 : i32
    %c0_20 = arith.constant 0 : index
    %c0_21 = arith.constant 0 : index
    %59 = vector.load %arg0[%c0_20, %c0_21] : memref<33x96xf32, #tpu.memory_space<vmem>>, vector<33x96xf32>
    %cst_22 = arith.constant dense<0.000000e+00> : vector<8x96xf32>
    %60 = tpu.matmul %58, %59, %cst_22 {dimension_numbers = #tpu.dot_dimension_numbers<[1], [0], [0], [1], [0, 0, 1, 1], [], []>} : vector<8x33xf32>, vector<33x96xf32>, vector<8x96xf32> -> vector<8x96xf32>
    %c0_23 = arith.constant 0 : index
    %c0_24 = arith.constant 0 : index
    %61 = vector.load %arg1[%c0_23, %c0_24] : memref<32x96xf32, #tpu.memory_space<vmem>>, vector<32x96xf32>
    %cst_25 = arith.constant dense<0.000000e+00> : vector<8x96xf32>
    %62 = tpu.matmul %36, %61, %cst_25 {dimension_numbers = #tpu.dot_dimension_numbers<[1], [0], [0], [1], [0, 0, 1, 1], [], []>} : vector<8x32xf32>, vector<32x96xf32>, vector<8x96xf32> -> vector<8x96xf32>
    %63 = vector.extract_strided_slice %60 {offsets = [0, 0], sizes = [8, 64], strides = [1, 1]} : vector<8x96xf32> to vector<8x64xf32>
    %64 = vector.extract_strided_slice %62 {offsets = [0, 0], sizes = [8, 64], strides = [1, 1]} : vector<8x96xf32> to vector<8x64xf32>
    %65 = arith.addf %63, %64 : vector<8x64xf32>
    %66 = arith.negf %65 : vector<8x64xf32>
    %67 = math.exp %66 : vector<8x64xf32>
    %cst_26 = arith.constant 1.000000e+00 : f32
    %68 = vector.broadcast %cst_26 : f32 to vector<8x64xf32>
    %69 = arith.addf %68, %67 : vector<8x64xf32>
    %70 = arith.divf %68, %69 : vector<8x64xf32>
    %71 = vector.extract_strided_slice %70 {offsets = [0, 0], sizes = [8, 32], strides = [1, 1]} : vector<8x64xf32> to vector<8x32xf32>
    %72 = vector.extract_strided_slice %70 {offsets = [0, 32], sizes = [8, 32], strides = [1, 1]} : vector<8x64xf32> to vector<8x32xf32>
    %73 = vector.extract_strided_slice %60 {offsets = [0, 64], sizes = [8, 32], strides = [1, 1]} : vector<8x96xf32> to vector<8x32xf32>
    %74 = vector.extract_strided_slice %62 {offsets = [0, 64], sizes = [8, 32], strides = [1, 1]} : vector<8x96xf32> to vector<8x32xf32>
    %c0_27 = arith.constant 0 : index
    %c0_28 = arith.constant 0 : index
    %75 = vector.load %arg2[%c0_27, %c0_28] : memref<1x32xf32, #tpu.memory_space<vmem>>, vector<1x32xf32>
    %76 = vector.broadcast %75 : vector<1x32xf32> to vector<8x32xf32>
    %77 = arith.addf %74, %76 : vector<8x32xf32>
    %78 = arith.mulf %71, %77 : vector<8x32xf32>
    %79 = arith.addf %73, %78 : vector<8x32xf32>
    %80 = math.tanh %79 : vector<8x32xf32>
    %cst_29 = arith.constant 1.000000e+00 : f32
    %81 = vector.broadcast %cst_29 : f32 to vector<8x32xf32>
    %82 = arith.subf %81, %72 : vector<8x32xf32>
    %83 = arith.mulf %82, %80 : vector<8x32xf32>
    %84 = arith.mulf %72, %36 : vector<8x32xf32>
    %85 = arith.addf %83, %84 : vector<8x32xf32>
    %c0_30 = arith.constant 0 : index
    %c0_31 = arith.constant 0 : index
    %86 = vector.load %arg3[%c0_30, %c0_31] : memref<32x128xf32, #tpu.memory_space<vmem>>, vector<32x128xf32>
    %cst_32 = arith.constant dense<0.000000e+00> : vector<8x128xf32>
    %87 = tpu.matmul %85, %86, %cst_32 {dimension_numbers = #tpu.dot_dimension_numbers<[1], [0], [0], [1], [0, 0, 1, 1], [], []>} : vector<8x32xf32>, vector<32x128xf32>, vector<8x128xf32> -> vector<8x128xf32>
    %c0_33 = arith.constant 0 : index
    %c0_34 = arith.constant 0 : index
    %88 = vector.load %arg4[%c0_33, %c0_34] : memref<1x128xf32, #tpu.memory_space<vmem>>, vector<1x128xf32>
    %89 = vector.broadcast %88 : vector<1x128xf32> to vector<8x128xf32>
    %90 = arith.addf %87, %89 : vector<8x128xf32>
    %91 = arith.index_cast %c1_i32 : i32 to index
    %c0_35 = arith.constant 0 : index
    %c0_36 = arith.constant 0 : index
    %92 = vector.load %arg6[%91, %c0_35, %c0_36] : memref<8x8x128xf32, #tpu.memory_space<vmem>>, vector<1x8x128xf32>
    %93 = vector.shape_cast %92 : vector<1x8x128xf32> to vector<8x128xf32>
    %94 = vector.shape_cast %90 : vector<8x128xf32> to vector<1x8x128xf32>
    tpu.vector_store %arg6[%91, %c0_35, %c0_36], %94 {strides = array<i32>} : memref<8x8x128xf32, #tpu.memory_space<vmem>>, vector<1x8x128xf32>,
    %cst_37 = arith.constant dense<0xFF800000> : vector<8xf32>
    %95 = vector.multi_reduction <maximumf>, %90, %cst_37 [1] : vector<8x128xf32> to vector<8xf32>
    %96 = vector.shape_cast %95 : vector<8xf32> to vector<8x1xf32>
    %97 = vector.broadcast %96 : vector<8x1xf32> to vector<8x128xf32>
    %98 = arith.cmpf oeq, %90, %97 : vector<8x128xf32>
    %c128_i32_38 = arith.constant 128 : i32
    %99 = vector.broadcast %c128_i32_38 : i32 to vector<8x128xi32>
    %100 = arith.select %98, %1, %99 : vector<8x128xi1>, vector<8x128xi32>
    %cst_39 = arith.constant dense<2147483647> : vector<8xi32>
    %101 = vector.multi_reduction <minsi>, %100, %cst_39 [1] : vector<8x128xi32> to vector<8xi32>
    %102 = vector.shape_cast %101 : vector<8xi32> to vector<8x1xi32>
    %103 = vector.broadcast %102 : vector<8x1xi32> to vector<8x33xi32>
    %104 = arith.cmpi eq, %0, %103 : vector<8x33xi32>
    %105 = arith.ori %104, %3 : vector<8x33xi1>
    %106 = arith.extui %105 : vector<8x33xi1> to vector<8x33xi32>
    %107 = arith.sitofp %106 : vector<8x33xi32> to vector<8x33xf32>
    %c2_i32 = arith.constant 2 : i32
    %c0_40 = arith.constant 0 : index
    %c0_41 = arith.constant 0 : index
    %108 = vector.load %arg0[%c0_40, %c0_41] : memref<33x96xf32, #tpu.memory_space<vmem>>, vector<33x96xf32>
    %cst_42 = arith.constant dense<0.000000e+00> : vector<8x96xf32>
    %109 = tpu.matmul %107, %108, %cst_42 {dimension_numbers = #tpu.dot_dimension_numbers<[1], [0], [0], [1], [0, 0, 1, 1], [], []>} : vector<8x33xf32>, vector<33x96xf32>, vector<8x96xf32> -> vector<8x96xf32>
    %c0_43 = arith.constant 0 : index
    %c0_44 = arith.constant 0 : index
    %110 = vector.load %arg1[%c0_43, %c0_44] : memref<32x96xf32, #tpu.memory_space<vmem>>, vector<32x96xf32>
    %cst_45 = arith.constant dense<0.000000e+00> : vector<8x96xf32>
    %111 = tpu.matmul %85, %110, %cst_45 {dimension_numbers = #tpu.dot_dimension_numbers<[1], [0], [0], [1], [0, 0, 1, 1], [], []>} : vector<8x32xf32>, vector<32x96xf32>, vector<8x96xf32> -> vector<8x96xf32>
    %112 = vector.extract_strided_slice %109 {offsets = [0, 0], sizes = [8, 64], strides = [1, 1]} : vector<8x96xf32> to vector<8x64xf32>
    %113 = vector.extract_strided_slice %111 {offsets = [0, 0], sizes = [8, 64], strides = [1, 1]} : vector<8x96xf32> to vector<8x64xf32>
    %114 = arith.addf %112, %113 : vector<8x64xf32>
    %115 = arith.negf %114 : vector<8x64xf32>
    %116 = math.exp %115 : vector<8x64xf32>
    %cst_46 = arith.constant 1.000000e+00 : f32
    %117 = vector.broadcast %cst_46 : f32 to vector<8x64xf32>
    %118 = arith.addf %117, %116 : vector<8x64xf32>
    %119 = arith.divf %117, %118 : vector<8x64xf32>
    %120 = vector.extract_strided_slice %119 {offsets = [0, 0], sizes = [8, 32], strides = [1, 1]} : vector<8x64xf32> to vector<8x32xf32>
    %121 = vector.extract_strided_slice %119 {offsets = [0, 32], sizes = [8, 32], strides = [1, 1]} : vector<8x64xf32> to vector<8x32xf32>
    %122 = vector.extract_strided_slice %109 {offsets = [0, 64], sizes = [8, 32], strides = [1, 1]} : vector<8x96xf32> to vector<8x32xf32>
    %123 = vector.extract_strided_slice %111 {offsets = [0, 64], sizes = [8, 32], strides = [1, 1]} : vector<8x96xf32> to vector<8x32xf32>
    %c0_47 = arith.constant 0 : index
    %c0_48 = arith.constant 0 : index
    %124 = vector.load %arg2[%c0_47, %c0_48] : memref<1x32xf32, #tpu.memory_space<vmem>>, vector<1x32xf32>
    %125 = vector.broadcast %124 : vector<1x32xf32> to vector<8x32xf32>
    %126 = arith.addf %123, %125 : vector<8x32xf32>
    %127 = arith.mulf %120, %126 : vector<8x32xf32>
    %128 = arith.addf %122, %127 : vector<8x32xf32>
    %129 = math.tanh %128 : vector<8x32xf32>
    %cst_49 = arith.constant 1.000000e+00 : f32
    %130 = vector.broadcast %cst_49 : f32 to vector<8x32xf32>
    %131 = arith.subf %130, %121 : vector<8x32xf32>
    %132 = arith.mulf %131, %129 : vector<8x32xf32>
    %133 = arith.mulf %121, %85 : vector<8x32xf32>
    %134 = arith.addf %132, %133 : vector<8x32xf32>
    %c0_50 = arith.constant 0 : index
    %c0_51 = arith.constant 0 : index
    %135 = vector.load %arg3[%c0_50, %c0_51] : memref<32x128xf32, #tpu.memory_space<vmem>>, vector<32x128xf32>
    %cst_52 = arith.constant dense<0.000000e+00> : vector<8x128xf32>
    %136 = tpu.matmul %134, %135, %cst_52 {dimension_numbers = #tpu.dot_dimension_numbers<[1], [0], [0], [1], [0, 0, 1, 1], [], []>} : vector<8x32xf32>, vector<32x128xf32>, vector<8x128xf32> -> vector<8x128xf32>
    %c0_53 = arith.constant 0 : index
    %c0_54 = arith.constant 0 : index
    %137 = vector.load %arg4[%c0_53, %c0_54] : memref<1x128xf32, #tpu.memory_space<vmem>>, vector<1x128xf32>
    %138 = vector.broadcast %137 : vector<1x128xf32> to vector<8x128xf32>
    %139 = arith.addf %136, %138 : vector<8x128xf32>
    %140 = arith.index_cast %c2_i32 : i32 to index
    %c0_55 = arith.constant 0 : index
    %c0_56 = arith.constant 0 : index
    %141 = vector.load %arg6[%140, %c0_55, %c0_56] : memref<8x8x128xf32, #tpu.memory_space<vmem>>, vector<1x8x128xf32>
    %142 = vector.shape_cast %141 : vector<1x8x128xf32> to vector<8x128xf32>
    %143 = vector.shape_cast %139 : vector<8x128xf32> to vector<1x8x128xf32>
    tpu.vector_store %arg6[%140, %c0_55, %c0_56], %143 {strides = array<i32>} : memref<8x8x128xf32, #tpu.memory_space<vmem>>, vector<1x8x128xf32>,
    %cst_57 = arith.constant dense<0xFF800000> : vector<8xf32>
    %144 = vector.multi_reduction <maximumf>, %139, %cst_57 [1] : vector<8x128xf32> to vector<8xf32>
    %145 = vector.shape_cast %144 : vector<8xf32> to vector<8x1xf32>
    %146 = vector.broadcast %145 : vector<8x1xf32> to vector<8x128xf32>
    %147 = arith.cmpf oeq, %139, %146 : vector<8x128xf32>
    %c128_i32_58 = arith.constant 128 : i32
    %148 = vector.broadcast %c128_i32_58 : i32 to vector<8x128xi32>
    %149 = arith.select %147, %1, %148 : vector<8x128xi1>, vector<8x128xi32>
    %cst_59 = arith.constant dense<2147483647> : vector<8xi32>
    %150 = vector.multi_reduction <minsi>, %149, %cst_59 [1] : vector<8x128xi32> to vector<8xi32>
    %151 = vector.shape_cast %150 : vector<8xi32> to vector<8x1xi32>
    %152 = vector.broadcast %151 : vector<8x1xi32> to vector<8x33xi32>
    %153 = arith.cmpi eq, %0, %152 : vector<8x33xi32>
    %154 = arith.ori %153, %3 : vector<8x33xi1>
    %155 = arith.extui %154 : vector<8x33xi1> to vector<8x33xi32>
    %156 = arith.sitofp %155 : vector<8x33xi32> to vector<8x33xf32>
    %c3_i32 = arith.constant 3 : i32
    %c0_60 = arith.constant 0 : index
    %c0_61 = arith.constant 0 : index
    %157 = vector.load %arg0[%c0_60, %c0_61] : memref<33x96xf32, #tpu.memory_space<vmem>>, vector<33x96xf32>
    %cst_62 = arith.constant dense<0.000000e+00> : vector<8x96xf32>
    %158 = tpu.matmul %156, %157, %cst_62 {dimension_numbers = #tpu.dot_dimension_numbers<[1], [0], [0], [1], [0, 0, 1, 1], [], []>} : vector<8x33xf32>, vector<33x96xf32>, vector<8x96xf32> -> vector<8x96xf32>
    %c0_63 = arith.constant 0 : index
    %c0_64 = arith.constant 0 : index
    %159 = vector.load %arg1[%c0_63, %c0_64] : memref<32x96xf32, #tpu.memory_space<vmem>>, vector<32x96xf32>
    %cst_65 = arith.constant dense<0.000000e+00> : vector<8x96xf32>
    %160 = tpu.matmul %134, %159, %cst_65 {dimension_numbers = #tpu.dot_dimension_numbers<[1], [0], [0], [1], [0, 0, 1, 1], [], []>} : vector<8x32xf32>, vector<32x96xf32>, vector<8x96xf32> -> vector<8x96xf32>
    %161 = vector.extract_strided_slice %158 {offsets = [0, 0], sizes = [8, 64], strides = [1, 1]} : vector<8x96xf32> to vector<8x64xf32>
    %162 = vector.extract_strided_slice %160 {offsets = [0, 0], sizes = [8, 64], strides = [1, 1]} : vector<8x96xf32> to vector<8x64xf32>
    %163 = arith.addf %161, %162 : vector<8x64xf32>
    %164 = arith.negf %163 : vector<8x64xf32>
    %165 = math.exp %164 : vector<8x64xf32>
    %cst_66 = arith.constant 1.000000e+00 : f32
    %166 = vector.broadcast %cst_66 : f32 to vector<8x64xf32>
    %167 = arith.addf %166, %165 : vector<8x64xf32>
    %168 = arith.divf %166, %167 : vector<8x64xf32>
    %169 = vector.extract_strided_slice %168 {offsets = [0, 0], sizes = [8, 32], strides = [1, 1]} : vector<8x64xf32> to vector<8x32xf32>
    %170 = vector.extract_strided_slice %168 {offsets = [0, 32], sizes = [8, 32], strides = [1, 1]} : vector<8x64xf32> to vector<8x32xf32>
    %171 = vector.extract_strided_slice %158 {offsets = [0, 64], sizes = [8, 32], strides = [1, 1]} : vector<8x96xf32> to vector<8x32xf32>
    %172 = vector.extract_strided_slice %160 {offsets = [0, 64], sizes = [8, 32], strides = [1, 1]} : vector<8x96xf32> to vector<8x32xf32>
    %c0_67 = arith.constant 0 : index
    %c0_68 = arith.constant 0 : index
    %173 = vector.load %arg2[%c0_67, %c0_68] : memref<1x32xf32, #tpu.memory_space<vmem>>, vector<1x32xf32>
    %174 = vector.broadcast %173 : vector<1x32xf32> to vector<8x32xf32>
    %175 = arith.addf %172, %174 : vector<8x32xf32>
    %176 = arith.mulf %169, %175 : vector<8x32xf32>
    %177 = arith.addf %171, %176 : vector<8x32xf32>
    %178 = math.tanh %177 : vector<8x32xf32>
    %cst_69 = arith.constant 1.000000e+00 : f32
    %179 = vector.broadcast %cst_69 : f32 to vector<8x32xf32>
    %180 = arith.subf %179, %170 : vector<8x32xf32>
    %181 = arith.mulf %180, %178 : vector<8x32xf32>
    %182 = arith.mulf %170, %134 : vector<8x32xf32>
    %183 = arith.addf %181, %182 : vector<8x32xf32>
    %c0_70 = arith.constant 0 : index
    %c0_71 = arith.constant 0 : index
    %184 = vector.load %arg3[%c0_70, %c0_71] : memref<32x128xf32, #tpu.memory_space<vmem>>, vector<32x128xf32>
    %cst_72 = arith.constant dense<0.000000e+00> : vector<8x128xf32>
    %185 = tpu.matmul %183, %184, %cst_72 {dimension_numbers = #tpu.dot_dimension_numbers<[1], [0], [0], [1], [0, 0, 1, 1], [], []>} : vector<8x32xf32>, vector<32x128xf32>, vector<8x128xf32> -> vector<8x128xf32>
    %c0_73 = arith.constant 0 : index
    %c0_74 = arith.constant 0 : index
    %186 = vector.load %arg4[%c0_73, %c0_74] : memref<1x128xf32, #tpu.memory_space<vmem>>, vector<1x128xf32>
    %187 = vector.broadcast %186 : vector<1x128xf32> to vector<8x128xf32>
    %188 = arith.addf %185, %187 : vector<8x128xf32>
    %189 = arith.index_cast %c3_i32 : i32 to index
    %c0_75 = arith.constant 0 : index
    %c0_76 = arith.constant 0 : index
    %190 = vector.load %arg6[%189, %c0_75, %c0_76] : memref<8x8x128xf32, #tpu.memory_space<vmem>>, vector<1x8x128xf32>
    %191 = vector.shape_cast %190 : vector<1x8x128xf32> to vector<8x128xf32>
    %192 = vector.shape_cast %188 : vector<8x128xf32> to vector<1x8x128xf32>
    tpu.vector_store %arg6[%189, %c0_75, %c0_76], %192 {strides = array<i32>} : memref<8x8x128xf32, #tpu.memory_space<vmem>>, vector<1x8x128xf32>,
    %cst_77 = arith.constant dense<0xFF800000> : vector<8xf32>
    %193 = vector.multi_reduction <maximumf>, %188, %cst_77 [1] : vector<8x128xf32> to vector<8xf32>
    %194 = vector.shape_cast %193 : vector<8xf32> to vector<8x1xf32>
    %195 = vector.broadcast %194 : vector<8x1xf32> to vector<8x128xf32>
    %196 = arith.cmpf oeq, %188, %195 : vector<8x128xf32>
    %c128_i32_78 = arith.constant 128 : i32
    %197 = vector.broadcast %c128_i32_78 : i32 to vector<8x128xi32>
    %198 = arith.select %196, %1, %197 : vector<8x128xi1>, vector<8x128xi32>
    %cst_79 = arith.constant dense<2147483647> : vector<8xi32>
    %199 = vector.multi_reduction <minsi>, %198, %cst_79 [1] : vector<8x128xi32> to vector<8xi32>
    %200 = vector.shape_cast %199 : vector<8xi32> to vector<8x1xi32>
    %201 = vector.broadcast %200 : vector<8x1xi32> to vector<8x33xi32>
    %202 = arith.cmpi eq, %0, %201 : vector<8x33xi32>
    %203 = arith.ori %202, %3 : vector<8x33xi1>
    %204 = arith.extui %203 : vector<8x33xi1> to vector<8x33xi32>
    %205 = arith.sitofp %204 : vector<8x33xi32> to vector<8x33xf32>
    %c4_i32 = arith.constant 4 : i32
    %c0_80 = arith.constant 0 : index
    %c0_81 = arith.constant 0 : index
    %206 = vector.load %arg0[%c0_80, %c0_81] : memref<33x96xf32, #tpu.memory_space<vmem>>, vector<33x96xf32>
    %cst_82 = arith.constant dense<0.000000e+00> : vector<8x96xf32>
    %207 = tpu.matmul %205, %206, %cst_82 {dimension_numbers = #tpu.dot_dimension_numbers<[1], [0], [0], [1], [0, 0, 1, 1], [], []>} : vector<8x33xf32>, vector<33x96xf32>, vector<8x96xf32> -> vector<8x96xf32>
    %c0_83 = arith.constant 0 : index
    %c0_84 = arith.constant 0 : index
    %208 = vector.load %arg1[%c0_83, %c0_84] : memref<32x96xf32, #tpu.memory_space<vmem>>, vector<32x96xf32>
    %cst_85 = arith.constant dense<0.000000e+00> : vector<8x96xf32>
    %209 = tpu.matmul %183, %208, %cst_85 {dimension_numbers = #tpu.dot_dimension_numbers<[1], [0], [0], [1], [0, 0, 1, 1], [], []>} : vector<8x32xf32>, vector<32x96xf32>, vector<8x96xf32> -> vector<8x96xf32>
    %210 = vector.extract_strided_slice %207 {offsets = [0, 0], sizes = [8, 64], strides = [1, 1]} : vector<8x96xf32> to vector<8x64xf32>
    %211 = vector.extract_strided_slice %209 {offsets = [0, 0], sizes = [8, 64], strides = [1, 1]} : vector<8x96xf32> to vector<8x64xf32>
    %212 = arith.addf %210, %211 : vector<8x64xf32>
    %213 = arith.negf %212 : vector<8x64xf32>
    %214 = math.exp %213 : vector<8x64xf32>
    %cst_86 = arith.constant 1.000000e+00 : f32
    %215 = vector.broadcast %cst_86 : f32 to vector<8x64xf32>
    %216 = arith.addf %215, %214 : vector<8x64xf32>
    %217 = arith.divf %215, %216 : vector<8x64xf32>
    %218 = vector.extract_strided_slice %217 {offsets = [0, 0], sizes = [8, 32], strides = [1, 1]} : vector<8x64xf32> to vector<8x32xf32>
    %219 = vector.extract_strided_slice %217 {offsets = [0, 32], sizes = [8, 32], strides = [1, 1]} : vector<8x64xf32> to vector<8x32xf32>
    %220 = vector.extract_strided_slice %207 {offsets = [0, 64], sizes = [8, 32], strides = [1, 1]} : vector<8x96xf32> to vector<8x32xf32>
    %221 = vector.extract_strided_slice %209 {offsets = [0, 64], sizes = [8, 32], strides = [1, 1]} : vector<8x96xf32> to vector<8x32xf32>
    %c0_87 = arith.constant 0 : index
    %c0_88 = arith.constant 0 : index
    %222 = vector.load %arg2[%c0_87, %c0_88] : memref<1x32xf32, #tpu.memory_space<vmem>>, vector<1x32xf32>
    %223 = vector.broadcast %222 : vector<1x32xf32> to vector<8x32xf32>
    %224 = arith.addf %221, %223 : vector<8x32xf32>
    %225 = arith.mulf %218, %224 : vector<8x32xf32>
    %226 = arith.addf %220, %225 : vector<8x32xf32>
    %227 = math.tanh %226 : vector<8x32xf32>
    %cst_89 = arith.constant 1.000000e+00 : f32
    %228 = vector.broadcast %cst_89 : f32 to vector<8x32xf32>
    %229 = arith.subf %228, %219 : vector<8x32xf32>
    %230 = arith.mulf %229, %227 : vector<8x32xf32>
    %231 = arith.mulf %219, %183 : vector<8x32xf32>
    %232 = arith.addf %230, %231 : vector<8x32xf32>
    %c0_90 = arith.constant 0 : index
    %c0_91 = arith.constant 0 : index
    %233 = vector.load %arg3[%c0_90, %c0_91] : memref<32x128xf32, #tpu.memory_space<vmem>>, vector<32x128xf32>
    %cst_92 = arith.constant dense<0.000000e+00> : vector<8x128xf32>
    %234 = tpu.matmul %232, %233, %cst_92 {dimension_numbers = #tpu.dot_dimension_numbers<[1], [0], [0], [1], [0, 0, 1, 1], [], []>} : vector<8x32xf32>, vector<32x128xf32>, vector<8x128xf32> -> vector<8x128xf32>
    %c0_93 = arith.constant 0 : index
    %c0_94 = arith.constant 0 : index
    %235 = vector.load %arg4[%c0_93, %c0_94] : memref<1x128xf32, #tpu.memory_space<vmem>>, vector<1x128xf32>
    %236 = vector.broadcast %235 : vector<1x128xf32> to vector<8x128xf32>
    %237 = arith.addf %234, %236 : vector<8x128xf32>
    %238 = arith.index_cast %c4_i32 : i32 to index
    %c0_95 = arith.constant 0 : index
    %c0_96 = arith.constant 0 : index
    %239 = vector.load %arg6[%238, %c0_95, %c0_96] : memref<8x8x128xf32, #tpu.memory_space<vmem>>, vector<1x8x128xf32>
    %240 = vector.shape_cast %239 : vector<1x8x128xf32> to vector<8x128xf32>
    %241 = vector.shape_cast %237 : vector<8x128xf32> to vector<1x8x128xf32>
    tpu.vector_store %arg6[%238, %c0_95, %c0_96], %241 {strides = array<i32>} : memref<8x8x128xf32, #tpu.memory_space<vmem>>, vector<1x8x128xf32>,
    %cst_97 = arith.constant dense<0xFF800000> : vector<8xf32>
    %242 = vector.multi_reduction <maximumf>, %237, %cst_97 [1] : vector<8x128xf32> to vector<8xf32>
    %243 = vector.shape_cast %242 : vector<8xf32> to vector<8x1xf32>
    %244 = vector.broadcast %243 : vector<8x1xf32> to vector<8x128xf32>
    %245 = arith.cmpf oeq, %237, %244 : vector<8x128xf32>
    %c128_i32_98 = arith.constant 128 : i32
    %246 = vector.broadcast %c128_i32_98 : i32 to vector<8x128xi32>
    %247 = arith.select %245, %1, %246 : vector<8x128xi1>, vector<8x128xi32>
    %cst_99 = arith.constant dense<2147483647> : vector<8xi32>
    %248 = vector.multi_reduction <minsi>, %247, %cst_99 [1] : vector<8x128xi32> to vector<8xi32>
    %249 = vector.shape_cast %248 : vector<8xi32> to vector<8x1xi32>
    %250 = vector.broadcast %249 : vector<8x1xi32> to vector<8x33xi32>
    %251 = arith.cmpi eq, %0, %250 : vector<8x33xi32>
    %252 = arith.ori %251, %3 : vector<8x33xi1>
    %253 = arith.extui %252 : vector<8x33xi1> to vector<8x33xi32>
    %254 = arith.sitofp %253 : vector<8x33xi32> to vector<8x33xf32>
    %c5_i32 = arith.constant 5 : i32
    %c0_100 = arith.constant 0 : index
    %c0_101 = arith.constant 0 : index
    %255 = vector.load %arg0[%c0_100, %c0_101] : memref<33x96xf32, #tpu.memory_space<vmem>>, vector<33x96xf32>
    %cst_102 = arith.constant dense<0.000000e+00> : vector<8x96xf32>
    %256 = tpu.matmul %254, %255, %cst_102 {dimension_numbers = #tpu.dot_dimension_numbers<[1], [0], [0], [1], [0, 0, 1, 1], [], []>} : vector<8x33xf32>, vector<33x96xf32>, vector<8x96xf32> -> vector<8x96xf32>
    %c0_103 = arith.constant 0 : index
    %c0_104 = arith.constant 0 : index
    %257 = vector.load %arg1[%c0_103, %c0_104] : memref<32x96xf32, #tpu.memory_space<vmem>>, vector<32x96xf32>
    %cst_105 = arith.constant dense<0.000000e+00> : vector<8x96xf32>
    %258 = tpu.matmul %232, %257, %cst_105 {dimension_numbers = #tpu.dot_dimension_numbers<[1], [0], [0], [1], [0, 0, 1, 1], [], []>} : vector<8x32xf32>, vector<32x96xf32>, vector<8x96xf32> -> vector<8x96xf32>
    %259 = vector.extract_strided_slice %256 {offsets = [0, 0], sizes = [8, 64], strides = [1, 1]} : vector<8x96xf32> to vector<8x64xf32>
    %260 = vector.extract_strided_slice %258 {offsets = [0, 0], sizes = [8, 64], strides = [1, 1]} : vector<8x96xf32> to vector<8x64xf32>
    %261 = arith.addf %259, %260 : vector<8x64xf32>
    %262 = arith.negf %261 : vector<8x64xf32>
    %263 = math.exp %262 : vector<8x64xf32>
    %cst_106 = arith.constant 1.000000e+00 : f32
    %264 = vector.broadcast %cst_106 : f32 to vector<8x64xf32>
    %265 = arith.addf %264, %263 : vector<8x64xf32>
    %266 = arith.divf %264, %265 : vector<8x64xf32>
    %267 = vector.extract_strided_slice %266 {offsets = [0, 0], sizes = [8, 32], strides = [1, 1]} : vector<8x64xf32> to vector<8x32xf32>
    %268 = vector.extract_strided_slice %266 {offsets = [0, 32], sizes = [8, 32], strides = [1, 1]} : vector<8x64xf32> to vector<8x32xf32>
    %269 = vector.extract_strided_slice %256 {offsets = [0, 64], sizes = [8, 32], strides = [1, 1]} : vector<8x96xf32> to vector<8x32xf32>
    %270 = vector.extract_strided_slice %258 {offsets = [0, 64], sizes = [8, 32], strides = [1, 1]} : vector<8x96xf32> to vector<8x32xf32>
    %c0_107 = arith.constant 0 : index
    %c0_108 = arith.constant 0 : index
    %271 = vector.load %arg2[%c0_107, %c0_108] : memref<1x32xf32, #tpu.memory_space<vmem>>, vector<1x32xf32>
    %272 = vector.broadcast %271 : vector<1x32xf32> to vector<8x32xf32>
    %273 = arith.addf %270, %272 : vector<8x32xf32>
    %274 = arith.mulf %267, %273 : vector<8x32xf32>
    %275 = arith.addf %269, %274 : vector<8x32xf32>
    %276 = math.tanh %275 : vector<8x32xf32>
    %cst_109 = arith.constant 1.000000e+00 : f32
    %277 = vector.broadcast %cst_109 : f32 to vector<8x32xf32>
    %278 = arith.subf %277, %268 : vector<8x32xf32>
    %279 = arith.mulf %278, %276 : vector<8x32xf32>
    %280 = arith.mulf %268, %232 : vector<8x32xf32>
    %281 = arith.addf %279, %280 : vector<8x32xf32>
    %c0_110 = arith.constant 0 : index
    %c0_111 = arith.constant 0 : index
    %282 = vector.load %arg3[%c0_110, %c0_111] : memref<32x128xf32, #tpu.memory_space<vmem>>, vector<32x128xf32>
    %cst_112 = arith.constant dense<0.000000e+00> : vector<8x128xf32>
    %283 = tpu.matmul %281, %282, %cst_112 {dimension_numbers = #tpu.dot_dimension_numbers<[1], [0], [0], [1], [0, 0, 1, 1], [], []>} : vector<8x32xf32>, vector<32x128xf32>, vector<8x128xf32> -> vector<8x128xf32>
    %c0_113 = arith.constant 0 : index
    %c0_114 = arith.constant 0 : index
    %284 = vector.load %arg4[%c0_113, %c0_114] : memref<1x128xf32, #tpu.memory_space<vmem>>, vector<1x128xf32>
    %285 = vector.broadcast %284 : vector<1x128xf32> to vector<8x128xf32>
    %286 = arith.addf %283, %285 : vector<8x128xf32>
    %287 = arith.index_cast %c5_i32 : i32 to index
    %c0_115 = arith.constant 0 : index
    %c0_116 = arith.constant 0 : index
    %288 = vector.load %arg6[%287, %c0_115, %c0_116] : memref<8x8x128xf32, #tpu.memory_space<vmem>>, vector<1x8x128xf32>
    %289 = vector.shape_cast %288 : vector<1x8x128xf32> to vector<8x128xf32>
    %290 = vector.shape_cast %286 : vector<8x128xf32> to vector<1x8x128xf32>
    tpu.vector_store %arg6[%287, %c0_115, %c0_116], %290 {strides = array<i32>} : memref<8x8x128xf32, #tpu.memory_space<vmem>>, vector<1x8x128xf32>,
    %cst_117 = arith.constant dense<0xFF800000> : vector<8xf32>
    %291 = vector.multi_reduction <maximumf>, %286, %cst_117 [1] : vector<8x128xf32> to vector<8xf32>
    %292 = vector.shape_cast %291 : vector<8xf32> to vector<8x1xf32>
    %293 = vector.broadcast %292 : vector<8x1xf32> to vector<8x128xf32>
    %294 = arith.cmpf oeq, %286, %293 : vector<8x128xf32>
    %c128_i32_118 = arith.constant 128 : i32
    %295 = vector.broadcast %c128_i32_118 : i32 to vector<8x128xi32>
    %296 = arith.select %294, %1, %295 : vector<8x128xi1>, vector<8x128xi32>
    %cst_119 = arith.constant dense<2147483647> : vector<8xi32>
    %297 = vector.multi_reduction <minsi>, %296, %cst_119 [1] : vector<8x128xi32> to vector<8xi32>
    %298 = vector.shape_cast %297 : vector<8xi32> to vector<8x1xi32>
    %299 = vector.broadcast %298 : vector<8x1xi32> to vector<8x33xi32>
    %300 = arith.cmpi eq, %0, %299 : vector<8x33xi32>
    %301 = arith.ori %300, %3 : vector<8x33xi1>
    %302 = arith.extui %301 : vector<8x33xi1> to vector<8x33xi32>
    %303 = arith.sitofp %302 : vector<8x33xi32> to vector<8x33xf32>
    %c6_i32 = arith.constant 6 : i32
    %c0_120 = arith.constant 0 : index
    %c0_121 = arith.constant 0 : index
    %304 = vector.load %arg0[%c0_120, %c0_121] : memref<33x96xf32, #tpu.memory_space<vmem>>, vector<33x96xf32>
    %cst_122 = arith.constant dense<0.000000e+00> : vector<8x96xf32>
    %305 = tpu.matmul %303, %304, %cst_122 {dimension_numbers = #tpu.dot_dimension_numbers<[1], [0], [0], [1], [0, 0, 1, 1], [], []>} : vector<8x33xf32>, vector<33x96xf32>, vector<8x96xf32> -> vector<8x96xf32>
    %c0_123 = arith.constant 0 : index
    %c0_124 = arith.constant 0 : index
    %306 = vector.load %arg1[%c0_123, %c0_124] : memref<32x96xf32, #tpu.memory_space<vmem>>, vector<32x96xf32>
    %cst_125 = arith.constant dense<0.000000e+00> : vector<8x96xf32>
    %307 = tpu.matmul %281, %306, %cst_125 {dimension_numbers = #tpu.dot_dimension_numbers<[1], [0], [0], [1], [0, 0, 1, 1], [], []>} : vector<8x32xf32>, vector<32x96xf32>, vector<8x96xf32> -> vector<8x96xf32>
    %308 = vector.extract_strided_slice %305 {offsets = [0, 0], sizes = [8, 64], strides = [1, 1]} : vector<8x96xf32> to vector<8x64xf32>
    %309 = vector.extract_strided_slice %307 {offsets = [0, 0], sizes = [8, 64], strides = [1, 1]} : vector<8x96xf32> to vector<8x64xf32>
    %310 = arith.addf %308, %309 : vector<8x64xf32>
    %311 = arith.negf %310 : vector<8x64xf32>
    %312 = math.exp %311 : vector<8x64xf32>
    %cst_126 = arith.constant 1.000000e+00 : f32
    %313 = vector.broadcast %cst_126 : f32 to vector<8x64xf32>
    %314 = arith.addf %313, %312 : vector<8x64xf32>
    %315 = arith.divf %313, %314 : vector<8x64xf32>
    %316 = vector.extract_strided_slice %315 {offsets = [0, 0], sizes = [8, 32], strides = [1, 1]} : vector<8x64xf32> to vector<8x32xf32>
    %317 = vector.extract_strided_slice %315 {offsets = [0, 32], sizes = [8, 32], strides = [1, 1]} : vector<8x64xf32> to vector<8x32xf32>
    %318 = vector.extract_strided_slice %305 {offsets = [0, 64], sizes = [8, 32], strides = [1, 1]} : vector<8x96xf32> to vector<8x32xf32>
    %319 = vector.extract_strided_slice %307 {offsets = [0, 64], sizes = [8, 32], strides = [1, 1]} : vector<8x96xf32> to vector<8x32xf32>
    %c0_127 = arith.constant 0 : index
    %c0_128 = arith.constant 0 : index
    %320 = vector.load %arg2[%c0_127, %c0_128] : memref<1x32xf32, #tpu.memory_space<vmem>>, vector<1x32xf32>
    %321 = vector.broadcast %320 : vector<1x32xf32> to vector<8x32xf32>
    %322 = arith.addf %319, %321 : vector<8x32xf32>
    %323 = arith.mulf %316, %322 : vector<8x32xf32>
    %324 = arith.addf %318, %323 : vector<8x32xf32>
    %325 = math.tanh %324 : vector<8x32xf32>
    %cst_129 = arith.constant 1.000000e+00 : f32
    %326 = vector.broadcast %cst_129 : f32 to vector<8x32xf32>
    %327 = arith.subf %326, %317 : vector<8x32xf32>
    %328 = arith.mulf %327, %325 : vector<8x32xf32>
    %329 = arith.mulf %317, %281 : vector<8x32xf32>
    %330 = arith.addf %328, %329 : vector<8x32xf32>
    %c0_130 = arith.constant 0 : index
    %c0_131 = arith.constant 0 : index
    %331 = vector.load %arg3[%c0_130, %c0_131] : memref<32x128xf32, #tpu.memory_space<vmem>>, vector<32x128xf32>
    %cst_132 = arith.constant dense<0.000000e+00> : vector<8x128xf32>
    %332 = tpu.matmul %330, %331, %cst_132 {dimension_numbers = #tpu.dot_dimension_numbers<[1], [0], [0], [1], [0, 0, 1, 1], [], []>} : vector<8x32xf32>, vector<32x128xf32>, vector<8x128xf32> -> vector<8x128xf32>
    %c0_133 = arith.constant 0 : index
    %c0_134 = arith.constant 0 : index
    %333 = vector.load %arg4[%c0_133, %c0_134] : memref<1x128xf32, #tpu.memory_space<vmem>>, vector<1x128xf32>
    %334 = vector.broadcast %333 : vector<1x128xf32> to vector<8x128xf32>
    %335 = arith.addf %332, %334 : vector<8x128xf32>
    %336 = arith.index_cast %c6_i32 : i32 to index
    %c0_135 = arith.constant 0 : index
    %c0_136 = arith.constant 0 : index
    %337 = vector.load %arg6[%336, %c0_135, %c0_136] : memref<8x8x128xf32, #tpu.memory_space<vmem>>, vector<1x8x128xf32>
    %338 = vector.shape_cast %337 : vector<1x8x128xf32> to vector<8x128xf32>
    %339 = vector.shape_cast %335 : vector<8x128xf32> to vector<1x8x128xf32>
    tpu.vector_store %arg6[%336, %c0_135, %c0_136], %339 {strides = array<i32>} : memref<8x8x128xf32, #tpu.memory_space<vmem>>, vector<1x8x128xf32>,
    %cst_137 = arith.constant dense<0xFF800000> : vector<8xf32>
    %340 = vector.multi_reduction <maximumf>, %335, %cst_137 [1] : vector<8x128xf32> to vector<8xf32>
    %341 = vector.shape_cast %340 : vector<8xf32> to vector<8x1xf32>
    %342 = vector.broadcast %341 : vector<8x1xf32> to vector<8x128xf32>
    %343 = arith.cmpf oeq, %335, %342 : vector<8x128xf32>
    %c128_i32_138 = arith.constant 128 : i32
    %344 = vector.broadcast %c128_i32_138 : i32 to vector<8x128xi32>
    %345 = arith.select %343, %1, %344 : vector<8x128xi1>, vector<8x128xi32>
    %cst_139 = arith.constant dense<2147483647> : vector<8xi32>
    %346 = vector.multi_reduction <minsi>, %345, %cst_139 [1] : vector<8x128xi32> to vector<8xi32>
    %347 = vector.shape_cast %346 : vector<8xi32> to vector<8x1xi32>
    %348 = vector.broadcast %347 : vector<8x1xi32> to vector<8x33xi32>
    %349 = arith.cmpi eq, %0, %348 : vector<8x33xi32>
    %350 = arith.ori %349, %3 : vector<8x33xi1>
    %351 = arith.extui %350 : vector<8x33xi1> to vector<8x33xi32>
    %352 = arith.sitofp %351 : vector<8x33xi32> to vector<8x33xf32>
    %c7_i32 = arith.constant 7 : i32
    %c0_140 = arith.constant 0 : index
    %c0_141 = arith.constant 0 : index
    %353 = vector.load %arg0[%c0_140, %c0_141] : memref<33x96xf32, #tpu.memory_space<vmem>>, vector<33x96xf32>
    %cst_142 = arith.constant dense<0.000000e+00> : vector<8x96xf32>
    %354 = tpu.matmul %352, %353, %cst_142 {dimension_numbers = #tpu.dot_dimension_numbers<[1], [0], [0], [1], [0, 0, 1, 1], [], []>} : vector<8x33xf32>, vector<33x96xf32>, vector<8x96xf32> -> vector<8x96xf32>
    %c0_143 = arith.constant 0 : index
    %c0_144 = arith.constant 0 : index
    %355 = vector.load %arg1[%c0_143, %c0_144] : memref<32x96xf32, #tpu.memory_space<vmem>>, vector<32x96xf32>
    %cst_145 = arith.constant dense<0.000000e+00> : vector<8x96xf32>
    %356 = tpu.matmul %330, %355, %cst_145 {dimension_numbers = #tpu.dot_dimension_numbers<[1], [0], [0], [1], [0, 0, 1, 1], [], []>} : vector<8x32xf32>, vector<32x96xf32>, vector<8x96xf32> -> vector<8x96xf32>
    %357 = vector.extract_strided_slice %354 {offsets = [0, 0], sizes = [8, 64], strides = [1, 1]} : vector<8x96xf32> to vector<8x64xf32>
    %358 = vector.extract_strided_slice %356 {offsets = [0, 0], sizes = [8, 64], strides = [1, 1]} : vector<8x96xf32> to vector<8x64xf32>
    %359 = arith.addf %357, %358 : vector<8x64xf32>
    %360 = arith.negf %359 : vector<8x64xf32>
    %361 = math.exp %360 : vector<8x64xf32>
    %cst_146 = arith.constant 1.000000e+00 : f32
    %362 = vector.broadcast %cst_146 : f32 to vector<8x64xf32>
    %363 = arith.addf %362, %361 : vector<8x64xf32>
    %364 = arith.divf %362, %363 : vector<8x64xf32>
    %365 = vector.extract_strided_slice %364 {offsets = [0, 0], sizes = [8, 32], strides = [1, 1]} : vector<8x64xf32> to vector<8x32xf32>
    %366 = vector.extract_strided_slice %364 {offsets = [0, 32], sizes = [8, 32], strides = [1, 1]} : vector<8x64xf32> to vector<8x32xf32>
    %367 = vector.extract_strided_slice %354 {offsets = [0, 64], sizes = [8, 32], strides = [1, 1]} : vector<8x96xf32> to vector<8x32xf32>
    %368 = vector.extract_strided_slice %356 {offsets = [0, 64], sizes = [8, 32], strides = [1, 1]} : vector<8x96xf32> to vector<8x32xf32>
    %c0_147 = arith.constant 0 : index
    %c0_148 = arith.constant 0 : index
    %369 = vector.load %arg2[%c0_147, %c0_148] : memref<1x32xf32, #tpu.memory_space<vmem>>, vector<1x32xf32>
    %370 = vector.broadcast %369 : vector<1x32xf32> to vector<8x32xf32>
    %371 = arith.addf %368, %370 : vector<8x32xf32>
    %372 = arith.mulf %365, %371 : vector<8x32xf32>
    %373 = arith.addf %367, %372 : vector<8x32xf32>
    %374 = math.tanh %373 : vector<8x32xf32>
    %cst_149 = arith.constant 1.000000e+00 : f32
    %375 = vector.broadcast %cst_149 : f32 to vector<8x32xf32>
    %376 = arith.subf %375, %366 : vector<8x32xf32>
    %377 = arith.mulf %376, %374 : vector<8x32xf32>
    %378 = arith.mulf %366, %330 : vector<8x32xf32>
    %379 = arith.addf %377, %378 : vector<8x32xf32>
    %c0_150 = arith.constant 0 : index
    %c0_151 = arith.constant 0 : index
    %380 = vector.load %arg3[%c0_150, %c0_151] : memref<32x128xf32, #tpu.memory_space<vmem>>, vector<32x128xf32>
    %cst_152 = arith.constant dense<0.000000e+00> : vector<8x128xf32>
    %381 = tpu.matmul %379, %380, %cst_152 {dimension_numbers = #tpu.dot_dimension_numbers<[1], [0], [0], [1], [0, 0, 1, 1], [], []>} : vector<8x32xf32>, vector<32x128xf32>, vector<8x128xf32> -> vector<8x128xf32>
    %c0_153 = arith.constant 0 : index
    %c0_154 = arith.constant 0 : index
    %382 = vector.load %arg4[%c0_153, %c0_154] : memref<1x128xf32, #tpu.memory_space<vmem>>, vector<1x128xf32>
    %383 = vector.broadcast %382 : vector<1x128xf32> to vector<8x128xf32>
    %384 = arith.addf %381, %383 : vector<8x128xf32>
    %385 = arith.index_cast %c7_i32 : i32 to index
    %c0_155 = arith.constant 0 : index
    %c0_156 = arith.constant 0 : index
    %386 = vector.load %arg6[%385, %c0_155, %c0_156] : memref<8x8x128xf32, #tpu.memory_space<vmem>>, vector<1x8x128xf32>
    %387 = vector.shape_cast %386 : vector<1x8x128xf32> to vector<8x128xf32>
    %388 = vector.shape_cast %384 : vector<8x128xf32> to vector<1x8x128xf32>
    tpu.vector_store %arg6[%385, %c0_155, %c0_156], %388 {strides = array<i32>} : memref<8x8x128xf32, #tpu.memory_space<vmem>>, vector<1x8x128xf32>,
    %cst_157 = arith.constant dense<0xFF800000> : vector<8xf32>
    %389 = vector.multi_reduction <maximumf>, %384, %cst_157 [1] : vector<8x128xf32> to vector<8xf32>
    %390 = vector.shape_cast %389 : vector<8xf32> to vector<8x1xf32>
    %391 = vector.broadcast %390 : vector<8x1xf32> to vector<8x128xf32>
    %392 = arith.cmpf oeq, %384, %391 : vector<8x128xf32>
    %c128_i32_158 = arith.constant 128 : i32
    %393 = vector.broadcast %c128_i32_158 : i32 to vector<8x128xi32>
    %394 = arith.select %392, %1, %393 : vector<8x128xi1>, vector<8x128xi32>
    %cst_159 = arith.constant dense<2147483647> : vector<8xi32>
    %395 = vector.multi_reduction <minsi>, %394, %cst_159 [1] : vector<8x128xi32> to vector<8xi32>
    %396 = vector.shape_cast %395 : vector<8xi32> to vector<8x1xi32>
    %397 = vector.broadcast %396 : vector<8x1xi32> to vector<8x33xi32>
    %398 = arith.cmpi eq, %0, %397 : vector<8x33xi32>
    %399 = arith.ori %398, %3 : vector<8x33xi1>
    %400 = arith.extui %399 : vector<8x33xi1> to vector<8x33xi32>
    %401 = arith.sitofp %400 : vector<8x33xi32> to vector<8x33xf32>
    %c8_i32 = arith.constant 8 : i32
    return
  }
}

</mosaic_0001>

<bundles_post_ra>
// kernel: tpu_custom_call.1
= control target key start
LH: loop header
LB: loop body
LE: loop exit
PB: predicated region body
PF: predicated region fallthrough
CT: control target
= control target key end

     0   :  { %11 = vsyncpa [#allocation3], 0  ;;  %s3710_s0 = inlined_call_operand.hbm [shape: f32[33,96], index: 0, kind: input, shape index: {}]   ;;  %s3711_s1 = inlined_call_operand.hbm [shape: f32[32,96], index: 1, kind: input, shape index: {}]   ;;  %s3712_s2 = inlined_call_operand.vmem [shape: f32[1,32], index: 2, kind: input, shape index: {}]   ;;  %s3713_s3 = inlined_call_operand.hbm [shape: f32[32,128], index: 3, kind: input, shape index: {}]   ;;  %s3714_s4 = inlined_call_operand.vmem [shape: f32[1,128], index: 4, kind: input, shape index: {}]   ;;  %s3715_s5 = inlined_call_operand.vmem [shape: f32[8,32], index: 5, kind: input, shape index: {}]   ;;  %s3716_s6 = inlined_call_operand.hbm [shape: f32[8,8,128], index: 6, kind: output, shape index: {}]  }
   0x1   :  { %12 = vsyncpa [#allocation6], 0 }
   0x2   :  { %13 = vsyncpa [#allocation4], 0  ;;  %s3255_s21 = smov [#allocation5]   ;;  %s3256_s23 = smov [#allocation2]  }
   0x3   :  { %s31_s22 = sshll.u32 %s3255_s21, 4  ;;  %s19_s24 = sshll.u32 %s3256_s23, 4  ;;  %s32_s22 = int_to_ptr.vmem [resolvable:$true] %s31_s22  ;;  %s3302_s24 = int_to_ptr.vmem [resolvable:$true] %s19_s24 }
   0x4   :  { %s3161_s27 = scalar_lea.hbm %s3711_s1, 512 }
   0x5   :  { %p3162_p0 = scmp.ne.s32.totalorder %s3711_s1, %s3161_s27  ;;  %p3165_p1 = scmp.lt.u32.totalorder %s3161_s27, %s3711_s1 }
   0x7   :  { %p3167_p2 = pnand %p3165_p1, %p3162_p0 }
   0x9   :  { %3170 = shalt.err (!%p3167_p2)
}
   0xa   :  { %s3171_s8 = scalar_lea.vmem %s32_s22, 512  ;;  %p3176_p4 = scmp.lt.s32.totalorder %s32_s22, %s32_s22 }
   0xb   :  { %p3172_p3 = scmp.ne.s32.totalorder %s32_s22, %s3171_s8  ;;  %p3177_p5 = scmp.lt.s32.totalorder %s3171_s8, %s3171_s8 }
   0xd   :  { %p3178_p6 = por %p3177_p5, %p3176_p4 }
   0xf   :  { %p3179_p7 = pnand %p3178_p6, %p3172_p3 }
  0x11   :  { %3182 = shalt.err (!%p3179_p7)
}
  0x12   :  { %s3257_s9 = smov 128   ;;  %s3258_s10 = smov 8  }
  0x13   :  { %37 = dma.hbm_to_vmem [thread:$0]  %s3711_s1, 512, %s32_s22, [#allocation6], %s3257_s9, %s3257_s9, %s3258_s10  }
  0x14   :  { %s3183_s15 = scalar_lea.hbm %s3710_s0, 640 }
  0x15   :  { %p3184_p8 = scmp.ne.s32.totalorder %s3710_s0, %s3183_s15  ;;  %p3187_p9 = scmp.lt.u32.totalorder %s3183_s15, %s3710_s0 }
  0x17   :  { %p3189_p10 = pnand %p3187_p9, %p3184_p8 }
  0x19   :  { %3192 = shalt.err (!%p3189_p10)
}
  0x1a   :  { %s3193_s20 = scalar_lea.vmem %s3302_s24, 640  ;;  %p3198_p12 = scmp.lt.s32.totalorder %s3302_s24, %s3302_s24 }
  0x1b   :  { %p3194_p11 = scmp.ne.s32.totalorder %s3302_s24, %s3193_s20  ;;  %p3199_p13 = scmp.lt.s32.totalorder %s3193_s20, %s3193_s20 }
  0x1d   :  { %p3200_p0 = por %p3199_p13, %p3198_p12 }
  0x1f   :  { %p3201_p1 = pnand %p3200_p0, %p3194_p11 }
  0x21   :  { %3204 = shalt.err (!%p3201_p1)
}
  0x22   :  { %25 = dma.hbm_to_vmem [thread:$0]  %s3710_s0, 640, %s3302_s24, [#allocation3], %s3257_s9, %s3257_s9, %s3258_s10  }
  0x23   :  { %s3259_s22 = smov [#allocation7]   ;;  %s3205_s27 = scalar_lea.hbm %s3713_s3, 512 }
  0x24   :  { %s45_s23 = sshll.u32 %s3259_s22, 4  ;;  %p3206_p2 = scmp.ne.s32.totalorder %s3713_s3, %s3205_s27  ;;  %s46_s23 = int_to_ptr.vmem [resolvable:$true] %s45_s23 }
  0x25   :  { %p3209_p3 = scmp.lt.u32.totalorder %s3205_s27, %s3713_s3 }
  0x27   :  { %p3211_p4 = pnand %p3209_p3, %p3206_p2 }
  0x29   :  { %3214 = shalt.err (!%p3211_p4)
}
  0x2a   :  { %s3215_s8 = scalar_lea.vmem %s46_s23, 512  ;;  %p3220_p6 = scmp.lt.s32.totalorder %s46_s23, %s46_s23 }
  0x2b   :  { %p3216_p5 = scmp.ne.s32.totalorder %s46_s23, %s3215_s8  ;;  %p3221_p7 = scmp.lt.s32.totalorder %s3215_s8, %s3215_s8 }
  0x2d   :  { %p3222_p8 = por %p3221_p7, %p3220_p6 }
  0x2f   :  { %p3223_p9 = pnand %p3222_p8, %p3216_p5 }
  0x31   :  { %3226 = shalt.err (!%p3223_p9)
}
  0x32   :  { %51 = dma.hbm_to_vmem [thread:$0]  %s3713_s3, 512, %s46_s23, [#allocation6], %s3257_s9, %s3257_s9, %s3258_s10  }
  0x33   :  { %3249 = dma.done.wait [#allocation3], 640  }
  0x34   :  { %3250 = vsyncadd [#allocation3], 4294966656 }
  0x35   :  { %3251 = dma.done.wait [#allocation6], 1024  }
  0x36   :  { %3252 = vsyncadd [#allocation6], 4294966272  ;;  %v3260_v0 = vmov 0.0|0.0   ;;  %vm3261_vm0 = vmmov 0   ;;  %v3262_v1 = vmov 0.0   ;;  %v65_v2 = vlaneseq  ;;  %v73_v4 = vld [vmem:[#allocation2] sm:$0xff] }
  0x37   :  { %2957 = vmatprep.subr.bf16.mxu0 %v3260_v0  ;;  %2963 = vmatprep.subr.bf16.mxu1 %v3260_v0  ;;  %v74_v5 = vld [vmem:[#allocation2 + $0x8] sm:$0xff]  ;;  %v157_v8 = vld [vmem:[#allocation5 + $0x8] sm:$0xff]  ;;  %v76_v10 = vld [vmem:[#allocation2 + $0x18] sm:$0xff]  ;;  %s3263_s12 = smov 64   ;;  %vm160_vm4 = vcmask 261120   ;;  %vm82_vm5 = vcmask 1040384  }
  0x38   :  { %2698 = vmatprep.mubr.msk.f32.mxu1 %vm3261_vm0, %v3262_v1  ;;  %2687 = vmatprep.mubr.msk.f32.mxu0 %vm3261_vm0, %v3262_v1  ;;  %v3360_v3 = vand.u32 127, %v65_v2  ;;  %v156_v6 = vld [vmem:[#allocation5] sm:$0xff]  ;;  %v3362_v7 = vpack.c.bf16 %v74_v5, %v73_v4  ;;  %v75_v9 = vld [vmem:[#allocation2 + $0x10] sm:$0xff]  ;;  %v158_v12 = vld [vmem:[#allocation5 + $0x10] sm:$0xff]  ;;  %vm78_vm6 = vcmask 269312   ;;  %s3265_s15 = smov 96  }
  0x39   :  { %v3364_v11 = vpack.c.bf16 %v157_v8, %v156_v6  ;;  %v159_v13 = vld [vmem:[#allocation5 + $0x18] sm:$0xff]  ;;  %v3367_v14 = vpack.c.bf16 %v76_v10, %v75_v9  ;;  %v273_v35 = vld [vmem:[#allocation7] sm:$0xff]  ;;  %v274_v36 = vld [vmem:[#allocation7 + $0x8] sm:$0xff] }
  0x3a   :  { %2959 = vmatpush3.bf16.msra.mxu0 %v3362_v7  ;;  %vm67_vm1 = vcmp.eq.s32.totalorder %v3360_v3, 32  ;;  %vm68_vm2 = vcmp.eq.s32.totalorder %v3360_v3, 0  ;;  %v3374_v15 = vld [vmem:[%s3712_s2] ss:$0 sm:$0xff]  ;;  %v3378_v16 = vpack.c.bf16 %v159_v13, %v158_v12  ;;  %v275_v37 = vld [vmem:[#allocation7 + $0x10] sm:$0xff]  ;;  %v3407_v38 = vpack.c.bf16 %v274_v36, %v273_v35 }
  0x3b   :  { %2965 = vmatpush3.bf16.msra.mxu1 %v3364_v11  ;;  %2960 = vmatprep.subr.bf16.mxu0 %v3260_v0  ;;  %vm69_vm3 = vmor %vm68_vm2, %vm67_vm1  ;;  %v72_v17 = vld [vmem:[%s3715_s5] sm:$0xff]  ;;  %s3264_s5 = smov 32  }
  0x3c   :  { %2966 = vmatprep.subr.bf16.mxu1 %v3260_v0  ;;  %247 = vrot.lane.b32.xlu0 %v3374_v15, %s3263_s12  ;;  %v77_v18 = vld [vmem:[#allocation2 + $0x20] sm:$0x1]  ;;  %v2485_v19 = vsel %vm69_vm3, 1.0, %v3262_v1 }
  0x3d   :  { %v276_v39 = vld [vmem:[#allocation7 + $0x18] sm:$0xff] }
  0x3e   :  { %2962 = vmatpush3.bf16.msra.mxu0 %v3367_v14  ;;  %v3410_v40 = vpack.c.bf16 %v276_v39, %v275_v37  ;;  %v3437_v49 = vld [vmem:[%s3714_s4] ss:$0 sm:$0xff] }
  0x3f   :  { %2968 = vmatpush3.bf16.msra.mxu1 %v3378_v16  ;;  %2685 = vmatprep.subr.mxu0 %v3262_v1  ;;  %v386_v63 = vld [vmem:[#allocation2 + $0x20] sm:$0x1] }
  0x40   :  { %2969 = vmatprep.subr.bf16.mxu1 %v3260_v0 }
  0x42   :  { %2699 = vmatmul.mubr.msk.f32.vlgmr.msra.gmra.mrb[0].mxu1 %vm160_vm4, %v72_v17  ;;  %2686 = vmatpush3.msk.msra.mxu0 %vm82_vm5, %v77_v18 }
  0x43   :  { %2688 = vmatmul.mubr.msk.f32.vlgmr.msra.gmra.mrb[0].mxu0 %vm78_vm6, %v2485_v19  ;;  %2709 = vmatprep.mubr.msk.f32.mxu1 %vm3261_vm0, %v3262_v1 }
  0x44   :  { %2975 = vmatprep.subr.bf16.mxu0 %v3260_v0  ;;  %2722 = vmatprep.mubr.msk.f32.mxu0 %vm3261_vm0, %v3262_v1 }
  0x45   :  { %2977 = vmatpush3.bf16.msra.mxu0 %v3362_v7  ;;  %2971 = vmatpush3.bf16.msra.mxu1 %v3407_v38 }
  0x46   :  { %2978 = vmatprep.subr.bf16.mxu0 %v3260_v0  ;;  %2972 = vmatprep.subr.bf16.mxu1 %v3260_v0 }
  0x49   :  { %2980 = vmatpush3.bf16.msra.mxu0 %v3367_v14  ;;  %2974 = vmatpush3.bf16.msra.mxu1 %v3410_v40 }
  0x4a   :  { %2720 = vmatprep.subr.mxu0 %v3262_v1  ;;  %2981 = vmatprep.subr.bf16.mxu1 %v3260_v0 }
  0x4d   :  { %2721 = vmatpush3.msk.msra.mxu0 %vm82_vm5, %v386_v63 }
  0x4e   :  { %2987 = vmatprep.subr.bf16.mxu0 %v3260_v0 }
  0xae   :  { %v248_v20 = vpop.permute.xlu0 %247 }
 0x115   :  { %v230_v21 = vpop.f32.mrb[0].mxu1 }
 0x116   :  { %v250_v22 = vadd.f32 %v248_v20, %v230_v21  ;;  %v2700_v23 = vpop.f32.mrb[1].mxu1  ;;  %v152_v24 = vpop.f32.mrb[0].mxu0 }
 0x117   :  { %v234_v25 = vadd.f32 %v230_v21, %v152_v24  ;;  %v2689_v26 = vpop.f32.mrb[1].mxu0 }
 0x118   :  { %252 = vrot.lane.b32.xlu0 %v250_v22, %s3263_s12 }
 0x119   :  { %v2489_v27 = vmul.f32 -1.442695, %v234_v25 }
 0x11b   :  { %3113 = vpow2.f32 %v2489_v27 }
 0x11c   :  { %268 = vrot.lane.b32.xlu0 %v72_v17, %s3264_s5 }
 0x125   :  { %v3114_v28 = vpop.eup %3113 }
 0x126   :  { %v238_v29 = vadd.f32 1.0, %v3114_v28 }
 0x128   :  { %3115 = vrcp.f32 %v238_v29 }
 0x132   :  { %v3116_v30 = vpop.eup %3115 }
 0x133   :  { %v262_v43 = vsub.f32 1.0, %v3116_v30 }
 0x18a   :  { %v253_v31 = vpop.permute.xlu0 %252 }
 0x18b   :  { %v255_v32 = vmul.f32 %v3116_v30, %v253_v31 }
 0x18d   :  { %257 = vrot.lane.b32.xlu1 %v255_v32, %s3263_s12 }
 0x18e   :  { %v269_v42 = vpop.permute.xlu0 %268 }
 0x18f   :  { %v271_v45 = vmul.f32 %v3116_v30, %v269_v42 }
 0x1ff   :  { %v258_v33 = vpop.permute.xlu1 %257 }
 0x200   :  { %v260_v34 = vadd.f32 %v258_v33, %v152_v24 }
 0x202   :  { %3117 = vtanh.f32 %v260_v34 }
 0x20c   :  { %v3118_v41 = vpop.eup %3117 }
 0x20d   :  { %264 = vrot.lane.b32.xlu1 %v3118_v41, %s3265_s15 }
 0x27f   :  { %v265_v44 = vpop.permute.xlu1 %264 }
 0x280   :  { %v267_v46 = vmul.f32 %v265_v44, %v262_v43 }
 0x282   :  { %v3416_v47 = vadd.f32 %v271_v45, %v267_v46 }
 0x284   :  { %285 = vrot.lane.b32.xlu1 %v3416_v47, %s3265_s15 }
 0x2f6   :  { %v286_v48 = vpop.permute.xlu1 %285 }
 0x2f7   :  { %2710 = vmatmul.mubr.msk.f32.vlgmr.msra.gmra.mrb[2].mxu1 %vm160_vm4, %v286_v48 }
 0x2f8   :  { %2983 = vmatpush3.bf16.msra.mxu1 %v3364_v11  ;;  %2733 = vmatprep.mubr.msk.f32.mxu1 %vm3261_vm0, %v3262_v1 }
 0x2f9   :  { %2984 = vmatprep.subr.bf16.mxu1 %v3260_v0 }
 0x2fc   :  { %2986 = vmatpush3.bf16.msra.mxu1 %v3378_v16 }
 0x2fd   :  { %2993 = vmatprep.subr.bf16.mxu1 %v3260_v0 }
 0x2ff   :  { %2734 = vmatmul.mubr.msk.f32.vlgmr.msra.gmra.mrb[4].mxu1 %vm160_vm4, %v286_v48 }
 0x300   :  { %2995 = vmatpush3.bf16.msra.mxu1 %v3362_v7  ;;  %2757 = vmatprep.mubr.msk.f32.mxu1 %vm3261_vm0, %v3262_v1 }
 0x301   :  { %2996 = vmatprep.subr.bf16.mxu1 %v3260_v0 }
 0x304   :  { %2998 = vmatpush3.bf16.msra.mxu1 %v3367_v14 }
 0x305   :  { %2755 = vmatprep.subr.mxu1 %v3262_v1 }
 0x3ca   :  { %v355_v50 = vpop.f32.mrb[2].mxu1 }
 0x3cb   :  { %v356_v51 = vadd.f32 %v3437_v49, %v355_v50  ;;  %v2711_v52 = vpop.f32.mrb[3].mxu1  ;;  %v687_v50 = vld [vmem:[#allocation2 + $0x20] sm:$0x1] }
 0x3cc   :  { %2756 = vmatpush3.msk.msra.mxu1 %vm82_vm5, %v687_v50 }
 0x3cd   :  { %359 = vst [vmem:[#allocation8] sm:$0xff] %v356_v51  ;;  %360 = vmax.xlane.f32.xlu0 %v356_v51  ;;  %3005 = vmatprep.subr.bf16.mxu1 %v3260_v0 }
 0x3d2   :  { %v533_v53 = vpop.f32.mrb[4].mxu1 }
 0x3d3   :  { %v2735_v54 = vpop.f32.mrb[5].mxu1 }
 0x45a   :  { %v361_v55 = vpop.xlane.xlu0 %360 }
 0x45b   :  { %vm362_vm7 = vcmp.eq.f32.partialorder %v356_v51, %v361_v55 }
 0x45c   :  { %v363_v56 = vsel %vm362_vm7, %v3360_v3, 128 }
 0x45d   :  { %v365_v57 = vshra.s32 %v363_v56, 16  ;;  %v364_v59 = vand.u32 65535, %v363_v56 }
 0x45f   :  { %v367_v58 = vcvt.s32.f32 %v365_v57  ;;  %v366_v61 = vcvt.s32.f32 %v364_v59 }
 0x461   :  { %368 = vmin.xlane.f32.xlu1 %v367_v58 }
 0x4ee   :  { %v369_v60 = vpop.xlane.xlu1 %368 }
 0x4ef   :  { %vm370_vm8 = vcmp.eq.f32.partialorder %v367_v58, %v369_v60  ;;  %v375_v2 = vcvt.f32.s32 %v369_v60 }
 0x4f0   :  { %v371_v62 = vsel %vm370_vm8, %v366_v61, inf }
 0x4f1   :  { %372 = vmin.xlane.f32.xlu0 %v371_v62  ;;  %v376_v5 = vshll.u32 %v375_v2, 16 }
 0x507   :  { %550 = vrot.lane.b32.xlu0 %v3374_v15, %s3263_s12 }
 0x57e   :  { %v373_v4 = vpop.xlane.xlu0 %372 }
 0x57f   :  { %v374_v6 = vcvt.f32.s32 %v373_v4 }
 0x581   :  { %v377_v8 = vadd.s32 %v376_v5, %v374_v6 }
 0x582   :  { %v551_v9 = vpop.permute.xlu0 %550 }
 0x583   :  { %vm378_vm9 = vcmp.eq.s32.totalorder %v3360_v3, %v377_v8  ;;  %v553_v10 = vadd.f32 %v551_v9, %v533_v53 }
 0x584   :  { %vm379_vm10 = vmor %vm378_vm9, %vm67_vm1 }
 0x585   :  { %555 = vrot.lane.b32.xlu1 %v553_v10, %s3263_s12  ;;  %v2493_v12 = vsel %vm379_vm10, 1.0, %v3262_v1 }
 0x586   :  { %2723 = vmatmul.mubr.msk.f32.vlgmr.msra.gmra.mrb[2].mxu0 %vm78_vm6, %v2493_v12 }
 0x587   :  { %2989 = vmatpush3.bf16.msra.mxu0 %v3407_v38  ;;  %2744 = vmatprep.mubr.msk.f32.mxu0 %vm3261_vm0, %v3262_v1 }
 0x588   :  { %2990 = vmatprep.subr.bf16.mxu0 %v3260_v0 }
 0x58b   :  { %2992 = vmatpush3.bf16.msra.mxu0 %v3410_v40 }
 0x58c   :  { %2999 = vmatprep.subr.bf16.mxu0 %v3260_v0 }
 0x5f7   :  { %v556_v23 = vpop.permute.xlu1 %555 }
 0x659   :  { %v459_v13 = vpop.f32.mrb[2].mxu0 }
 0x65a   :  { %v537_v17 = vadd.f32 %v533_v53, %v459_v13  ;;  %v2724_v18 = vpop.f32.mrb[3].mxu0 }
 0x65c   :  { %v2497_v19 = vmul.f32 -1.442695, %v537_v17 }
 0x65e   :  { %3119 = vpow2.f32 %v2497_v19 }
 0x668   :  { %v3120_v20 = vpop.eup %3119 }
 0x669   :  { %v541_v21 = vadd.f32 1.0, %v3120_v20 }
 0x66b   :  { %3121 = vrcp.f32 %v541_v21 }
 0x675   :  { %v3122_v22 = vpop.eup %3121 }
 0x676   :  { %v558_v24 = vmul.f32 %v3122_v22, %v556_v23  ;;  %v565_v28 = vsub.f32 1.0, %v3122_v22  ;;  %v571_v30 = vmul.f32 %v3122_v22, %v3416_v47 }
 0x678   :  { %560 = vrot.lane.b32.xlu1 %v558_v24, %s3263_s12 }
 0x6ea   :  { %v561_v25 = vpop.permute.xlu1 %560 }
 0x6eb   :  { %v563_v26 = vadd.f32 %v561_v25, %v459_v13 }
 0x6ed   :  { %3123 = vtanh.f32 %v563_v26 }
 0x6f7   :  { %v3124_v27 = vpop.eup %3123 }
 0x6f8   :  { %567 = vrot.lane.b32.xlu0 %v3124_v27, %s3265_s15 }
 0x76a   :  { %v568_v29 = vpop.permute.xlu0 %567 }
 0x76b   :  { %v570_v31 = vmul.f32 %v568_v29, %v565_v28 }
 0x76d   :  { %v3460_v32 = vadd.f32 %v571_v30, %v570_v31 }
 0x76f   :  { %585 = vrot.lane.b32.xlu1 %v3460_v32, %s3265_s15 }
 0x7e1   :  { %v586_v33 = vpop.permute.xlu1 %585 }
 0x7e2   :  { %2745 = vmatmul.mubr.msk.f32.vlgmr.msra.gmra.mrb[4].mxu0 %vm160_vm4, %v586_v33 }
 0x7e3   :  { %3001 = vmatpush3.bf16.msra.mxu0 %v3364_v11  ;;  %2768 = vmatprep.mubr.msk.f32.mxu0 %vm3261_vm0, %v3262_v1 }
 0x7e4   :  { %3002 = vmatprep.subr.bf16.mxu0 %v3260_v0 }
 0x7e7   :  { %3004 = vmatpush3.bf16.msra.mxu0 %v3378_v16 }
 0x7e8   :  { %3011 = vmatprep.subr.bf16.mxu0 %v3260_v0 }
 0x7ea   :  { %2769 = vmatmul.mubr.msk.f32.vlgmr.msra.gmra.mrb[6].mxu0 %vm160_vm4, %v586_v33 }
 0x7eb   :  { %3013 = vmatpush3.bf16.msra.mxu0 %v3362_v7  ;;  %2792 = vmatprep.mubr.msk.f32.mxu0 %vm3261_vm0, %v3262_v1 }
 0x7ec   :  { %3014 = vmatprep.subr.bf16.mxu0 %v3260_v0 }
 0x7ef   :  { %3016 = vmatpush3.bf16.msra.mxu0 %v3367_v14 }
 0x7f0   :  { %2790 = vmatprep.subr.mxu0 %v3262_v1 }
 0x8b5   :  { %v655_v34 = vpop.f32.mrb[4].mxu0 }
 0x8b6   :  { %v656_v35 = vadd.f32 %v3437_v49, %v655_v34  ;;  %v2746_v36 = vpop.f32.mrb[5].mxu0  ;;  %v988_v34 = vld [vmem:[#allocation2 + $0x20] sm:$0x1] }
 0x8b7   :  { %2791 = vmatpush3.msk.msra.mxu0 %vm82_vm5, %v988_v34 }
 0x8b8   :  { %660 = vst [vmem:[#allocation8 + $0x8] sm:$0xff] %v656_v35  ;;  %661 = vmax.xlane.f32.xlu0 %v656_v35  ;;  %3023 = vmatprep.subr.bf16.mxu0 %v3260_v0 }
 0x8bd   :  { %v834_v37 = vpop.f32.mrb[6].mxu0 }
 0x8be   :  { %v2770_v39 = vpop.f32.mrb[7].mxu0 }
 0x945   :  { %v662_v41 = vpop.xlane.xlu0 %661 }
 0x946   :  { %vm663_vm11 = vcmp.eq.f32.partialorder %v656_v35, %v662_v41 }
 0x947   :  { %v664_v42 = vsel %vm663_vm11, %v3360_v3, 128 }
 0x948   :  { %v666_v43 = vshra.s32 %v664_v42, 16  ;;  %v665_v45 = vand.u32 65535, %v664_v42 }
 0x94a   :  { %v668_v44 = vcvt.s32.f32 %v666_v43  ;;  %v667_v47 = vcvt.s32.f32 %v665_v45 }
 0x94c   :  { %669 = vmin.xlane.f32.xlu1 %v668_v44 }
 0x9d9   :  { %v670_v46 = vpop.xlane.xlu1 %669 }
 0x9da   :  { %vm671_vm12 = vcmp.eq.f32.partialorder %v668_v44, %v670_v46  ;;  %v676_v51 = vcvt.f32.s32 %v670_v46 }
 0x9db   :  { %v672_v48 = vsel %vm671_vm12, %v667_v47, inf }
 0x9dc   :  { %673 = vmin.xlane.f32.xlu0 %v672_v48  ;;  %v677_v53 = vshll.u32 %v676_v51, 16 }
 0x9f2   :  { %851 = vrot.lane.b32.xlu0 %v3374_v15, %s3263_s12 }
 0xa69   :  { %v674_v52 = vpop.xlane.xlu0 %673 }
 0xa6a   :  { %v675_v54 = vcvt.f32.s32 %v674_v52 }
 0xa6c   :  { %v678_v55 = vadd.s32 %v677_v53, %v675_v54 }
 0xa6d   :  { %v852_v56 = vpop.permute.xlu0 %851 }
 0xa6e   :  { %vm679_vm13 = vcmp.eq.s32.totalorder %v3360_v3, %v678_v55  ;;  %v854_v57 = vadd.f32 %v852_v56, %v834_v37 }
 0xa6f   :  { %vm680_vm14 = vmor %vm679_vm13, %vm67_vm1 }
 0xa70   :  { %856 = vrot.lane.b32.xlu1 %v854_v57, %s3263_s12  ;;  %v2501_v58 = vsel %vm680_vm14, 1.0, %v3262_v1 }
 0xa71   :  { %2758 = vmatmul.mubr.msk.f32.vlgmr.msra.gmra.mrb[6].mxu1 %vm78_vm6, %v2501_v58 }
 0xa72   :  { %3007 = vmatpush3.bf16.msra.mxu1 %v3407_v38  ;;  %2779 = vmatprep.mubr.msk.f32.mxu1 %vm3261_vm0, %v3262_v1 }
 0xa73   :  { %3008 = vmatprep.subr.bf16.mxu1 %v3260_v0 }
 0xa76   :  { %3010 = vmatpush3.bf16.msra.mxu1 %v3410_v40 }
 0xa77   :  { %3017 = vmatprep.subr.bf16.mxu1 %v3260_v0 }
 0xae2   :  { %v857_v5 = vpop.permute.xlu1 %856 }
 0xb44   :  { %v760_v59 = vpop.f32.mrb[6].mxu1 }
 0xb45   :  { %v838_v60 = vadd.f32 %v834_v37, %v760_v59  ;;  %v2759_v61 = vpop.f32.mrb[7].mxu1 }
 0xb47   :  { %v2505_v62 = vmul.f32 -1.442695, %v838_v60 }
 0xb49   :  { %3125 = vpow2.f32 %v2505_v62 }
 0xb53   :  { %v3126_v63 = vpop.eup %3125 }
 0xb54   :  { %v842_v2 = vadd.f32 1.0, %v3126_v63 }
 0xb56   :  { %3127 = vrcp.f32 %v842_v2 }
 0xb60   :  { %v3128_v4 = vpop.eup %3127 }
 0xb61   :  { %v859_v6 = vmul.f32 %v3128_v4, %v857_v5  ;;  %v866_v12 = vsub.f32 1.0, %v3128_v4  ;;  %v872_v17 = vmul.f32 %v3128_v4, %v3460_v32 }
 0xb63   :  { %861 = vrot.lane.b32.xlu1 %v859_v6, %s3263_s12 }
 0xbd5   :  { %v862_v8 = vpop.permute.xlu1 %861 }
 0xbd6   :  { %v864_v9 = vadd.f32 %v862_v8, %v760_v59 }
 0xbd8   :  { %3129 = vtanh.f32 %v864_v9 }
 0xbe2   :  { %v3130_v10 = vpop.eup %3129 }
 0xbe3   :  { %868 = vrot.lane.b32.xlu0 %v3130_v10, %s3265_s15 }
 0xc55   :  { %v869_v13 = vpop.permute.xlu0 %868 }
 0xc56   :  { %v871_v18 = vmul.f32 %v869_v13, %v866_v12 }
 0xc58   :  { %v3499_v19 = vadd.f32 %v872_v17, %v871_v18 }
 0xc5a   :  { %886 = vrot.lane.b32.xlu1 %v3499_v19, %s3265_s15 }
 0xccc   :  { %v887_v20 = vpop.permute.xlu1 %886 }
 0xccd   :  { %2780 = vmatmul.mubr.msk.f32.vlgmr.msra.gmra.mrb[8].mxu1 %vm160_vm4, %v887_v20 }
 0xcce   :  { %3019 = vmatpush3.bf16.msra.mxu1 %v3364_v11  ;;  %2803 = vmatprep.mubr.msk.f32.mxu1 %vm3261_vm0, %v3262_v1 }
 0xccf   :  { %3020 = vmatprep.subr.bf16.mxu1 %v3260_v0 }
 0xcd2   :  { %3022 = vmatpush3.bf16.msra.mxu1 %v3378_v16 }
 0xcd3   :  { %3029 = vmatprep.subr.bf16.mxu1 %v3260_v0 }
 0xcd5   :  { %2804 = vmatmul.mubr.msk.f32.vlgmr.msra.gmra.mrb[10].mxu1 %vm160_vm4, %v887_v20 }
 0xcd6   :  { %3031 = vmatpush3.bf16.msra.mxu1 %v3362_v7  ;;  %2827 = vmatprep.mubr.msk.f32.mxu1 %vm3261_vm0, %v3262_v1 }
 0xcd7   :  { %3032 = vmatprep.subr.bf16.mxu1 %v3260_v0 }
 0xcda   :  { %3034 = vmatpush3.bf16.msra.mxu1 %v3367_v14 }
 0xcdb   :  { %2825 = vmatprep.subr.mxu1 %v3262_v1 }
 0xda0   :  { %v956_v21 = vpop.f32.mrb[8].mxu1 }
 0xda1   :  { %v957_v22 = vadd.f32 %v3437_v49, %v956_v21  ;;  %v2781_v23 = vpop.f32.mrb[9].mxu1 }
 0xda3   :  { %961 = vst [vmem:[#allocation8 + $0x10] sm:$0xff] %v957_v22  ;;  %962 = vmax.xlane.f32.xlu0 %v957_v22 }
 0xda8   :  { %v1135_v24 = vpop.f32.mrb[10].mxu1 }
 0xda9   :  { %v2805_v25 = vpop.f32.mrb[11].mxu1 }
 0xe30   :  { %v963_v26 = vpop.xlane.xlu0 %962 }
 0xe31   :  { %vm964_vm15 = vcmp.eq.f32.partialorder %v957_v22, %v963_v26 }
 0xe32   :  { %v965_v27 = vsel %vm964_vm15, %v3360_v3, 128 }
 0xe33   :  { %v967_v28 = vshra.s32 %v965_v27, 16  ;;  %v966_v30 = vand.u32 65535, %v965_v27 }
 0xe35   :  { %v969_v29 = vcvt.s32.f32 %v967_v28  ;;  %v968_v32 = vcvt.s32.f32 %v966_v30 }
 0xe37   :  { %970 = vmin.xlane.f32.xlu1 %v969_v29 }
 0xec4   :  { %v971_v31 = vpop.xlane.xlu1 %970 }
 0xec5   :  { %vm972_vm2 = vcmp.eq.f32.partialorder %v969_v29, %v971_v31  ;;  %v977_v35 = vcvt.f32.s32 %v971_v31 }
 0xec6   :  { %v973_v33 = vsel %vm972_vm2, %v968_v32, inf }
 0xec7   :  { %974 = vmin.xlane.f32.xlu0 %v973_v33  ;;  %v978_v37 = vshll.u32 %v977_v35, 16 }
 0xedd   :  { %1152 = vrot.lane.b32.xlu0 %v3374_v15, %s3263_s12 }
 0xf54   :  { %v975_v36 = vpop.xlane.xlu0 %974 }
 0xf55   :  { %v976_v39 = vcvt.f32.s32 %v975_v36 }
 0xf57   :  { %v979_v41 = vadd.s32 %v978_v37, %v976_v39 }
 0xf58   :  { %v1153_v42 = vpop.permute.xlu0 %1152 }
 0xf59   :  { %vm980_vm3 = vcmp.eq.s32.totalorder %v3360_v3, %v979_v41  ;;  %v1155_v43 = vadd.f32 %v1153_v42, %v1135_v24 }
 0xf5a   :  { %vm981_vm7 = vmor %vm980_vm3, %vm67_vm1 }
 0xf5b   :  { %1157 = vrot.lane.b32.xlu1 %v1155_v43, %s3263_s12  ;;  %v2509_v44 = vsel %vm981_vm7, 1.0, %v3262_v1 }
 0xf5c   :  { %2793 = vmatmul.mubr.msk.f32.vlgmr.msra.gmra.mrb[8].mxu0 %vm78_vm6, %v2509_v44 }
 0xf5d   :  { %3025 = vmatpush3.bf16.msra.mxu0 %v3407_v38  ;;  %2814 = vmatprep.mubr.msk.f32.mxu0 %vm3261_vm0, %v3262_v1 }
 0xf5e   :  { %3026 = vmatprep.subr.bf16.mxu0 %v3260_v0 }
 0xf61   :  { %3028 = vmatpush3.bf16.msra.mxu0 %v3410_v40 }
 0xf62   :  { %3035 = vmatprep.subr.bf16.mxu0 %v3260_v0 }
 0xfcd   :  { %v1158_v53 = vpop.permute.xlu1 %1157 }
0x102f   :  { %v1061_v45 = vpop.f32.mrb[8].mxu0 }
0x1030   :  { %v1139_v46 = vadd.f32 %v1135_v24, %v1061_v45  ;;  %v2794_v47 = vpop.f32.mrb[9].mxu0 }
0x1032   :  { %v2513_v48 = vmul.f32 -1.442695, %v1139_v46 }
0x1034   :  { %3131 = vpow2.f32 %v2513_v48 }
0x103e   :  { %v3132_v50 = vpop.eup %3131 }
0x103f   :  { %v1143_v51 = vadd.f32 1.0, %v3132_v50 }
0x1041   :  { %3133 = vrcp.f32 %v1143_v51 }
0x104b   :  { %v3134_v52 = vpop.eup %3133 }
0x104c   :  { %v1160_v54 = vmul.f32 %v3134_v52, %v1158_v53  ;;  %v1167_v58 = vsub.f32 1.0, %v3134_v52  ;;  %v1173_v60 = vmul.f32 %v3134_v52, %v3499_v19  ;;  %v1289_v19 = vld [vmem:[#allocation2 + $0x20] sm:$0x1] }
0x104d   :  { %2826 = vmatpush3.msk.msra.mxu1 %vm82_vm5, %v1289_v19 }
0x104e   :  { %1162 = vrot.lane.b32.xlu1 %v1160_v54, %s3263_s12  ;;  %3041 = vmatprep.subr.bf16.mxu1 %v3260_v0 }
0x10c0   :  { %v1163_v55 = vpop.permute.xlu1 %1162 }
0x10c1   :  { %v1165_v56 = vadd.f32 %v1163_v55, %v1061_v45 }
0x10c3   :  { %3135 = vtanh.f32 %v1165_v56 }
0x10cd   :  { %v3136_v57 = vpop.eup %3135 }
0x10ce   :  { %1169 = vrot.lane.b32.xlu0 %v3136_v57, %s3265_s15 }
0x1140   :  { %v1170_v59 = vpop.permute.xlu0 %1169 }
0x1141   :  { %v1172_v61 = vmul.f32 %v1170_v59, %v1167_v58 }
0x1143   :  { %v3538_v62 = vadd.f32 %v1173_v60, %v1172_v61  ;;  %v1590_v60 = vld [vmem:[#allocation2 + $0x20] sm:$0x1] }
0x1145   :  { %1187 = vrot.lane.b32.xlu1 %v3538_v62, %s3265_s15 }
0x11b7   :  { %v1188_v63 = vpop.permute.xlu1 %1187 }
0x11b8   :  { %2815 = vmatmul.mubr.msk.f32.vlgmr.msra.gmra.mrb[10].mxu0 %vm160_vm4, %v1188_v63 }
0x11b9   :  { %3037 = vmatpush3.bf16.msra.mxu0 %v3364_v11  ;;  %2838 = vmatprep.mubr.msk.f32.mxu0 %vm3261_vm0, %v3262_v1 }
0x11ba   :  { %3038 = vmatprep.subr.bf16.mxu0 %v3260_v0 }
0x11bd   :  { %3040 = vmatpush3.bf16.msra.mxu0 %v3378_v16 }
0x11be   :  { %3047 = vmatprep.subr.bf16.mxu0 %v3260_v0 }
0x11c0   :  { %2839 = vmatmul.mubr.msk.f32.vlgmr.msra.gmra.mrb[12].mxu0 %vm160_vm4, %v1188_v63 }
0x11c1   :  { %3049 = vmatpush3.bf16.msra.mxu0 %v3362_v7  ;;  %2862 = vmatprep.mubr.msk.f32.mxu0 %vm3261_vm0, %v3262_v1 }
0x11c2   :  { %3050 = vmatprep.subr.bf16.mxu0 %v3260_v0 }
0x11c5   :  { %3052 = vmatpush3.bf16.msra.mxu0 %v3367_v14 }
0x11c6   :  { %2860 = vmatprep.subr.mxu0 %v3262_v1 }
0x11c9   :  { %2861 = vmatpush3.msk.msra.mxu0 %vm82_vm5, %v1590_v60 }
0x11ca   :  { %3059 = vmatprep.subr.bf16.mxu0 %v3260_v0 }
0x128b   :  { %v1257_v2 = vpop.f32.mrb[10].mxu0 }
0x128c   :  { %v1258_v4 = vadd.f32 %v3437_v49, %v1257_v2  ;;  %v2816_v5 = vpop.f32.mrb[11].mxu0 }
0x128e   :  { %1262 = vst [vmem:[#allocation8 + $0x18] sm:$0xff] %v1258_v4  ;;  %1263 = vmax.xlane.f32.xlu0 %v1258_v4 }
0x1293   :  { %v1436_v6 = vpop.f32.mrb[12].mxu0 }
0x1294   :  { %v2840_v8 = vpop.f32.mrb[13].mxu0 }
0x131b   :  { %v1264_v9 = vpop.xlane.xlu0 %1263 }
0x131c   :  { %vm1265_vm8 = vcmp.eq.f32.partialorder %v1258_v4, %v1264_v9 }
0x131d   :  { %v1266_v7 = vsel %vm1265_vm8, %v3360_v3, 128 }
0x131e   :  { %v1268_v10 = vshra.s32 %v1266_v7, 16  ;;  %v1267_v13 = vand.u32 65535, %v1266_v7 }
0x1320   :  { %v1270_v12 = vcvt.s32.f32 %v1268_v10  ;;  %v1269_v14 = vcvt.s32.f32 %v1267_v13 }
0x1322   :  { %1271 = vmin.xlane.f32.xlu1 %v1270_v12 }
0x13af   :  { %v1272_v17 = vpop.xlane.xlu1 %1271 }
0x13b0   :  { %vm1273_vm9 = vcmp.eq.f32.partialorder %v1270_v12, %v1272_v17  ;;  %v1278_v20 = vcvt.f32.s32 %v1272_v17 }
0x13b1   :  { %v1274_v18 = vsel %vm1273_vm9, %v1269_v14, inf }
0x13b2   :  { %1275 = vmin.xlane.f32.xlu0 %v1274_v18  ;;  %v1279_v22 = vshll.u32 %v1278_v20, 16 }
0x13c8   :  { %1453 = vrot.lane.b32.xlu0 %v3374_v15, %s3263_s12 }
0x143f   :  { %v1276_v21 = vpop.xlane.xlu0 %1275 }
0x1440   :  { %v1277_v23 = vcvt.f32.s32 %v1276_v21 }
0x1442   :  { %v1280_v24 = vadd.s32 %v1279_v22, %v1277_v23 }
0x1443   :  { %v1454_v25 = vpop.permute.xlu0 %1453 }
0x1444   :  { %vm1281_vm10 = vcmp.eq.s32.totalorder %v3360_v3, %v1280_v24  ;;  %v1456_v26 = vadd.f32 %v1454_v25, %v1436_v6  ;;  %v1968_v25 = vld [vmem:[#allocation5] sm:$0xff] }
0x1445   :  { %vm1282_vm11 = vmor %vm1281_vm10, %vm67_vm1 }
0x1446   :  { %1458 = vrot.lane.b32.xlu1 %v1456_v26, %s3263_s12  ;;  %v2517_v27 = vsel %vm1282_vm11, 1.0, %v3262_v1  ;;  %v1969_v26 = vld [vmem:[#allocation5 + $0x8] sm:$0xff] }
0x1447   :  { %2828 = vmatmul.mubr.msk.f32.vlgmr.msra.gmra.mrb[12].mxu1 %vm78_vm6, %v2517_v27  ;;  %v3616_v27 = vpack.c.bf16 %v1969_v26, %v1968_v25 }
0x1448   :  { %3043 = vmatpush3.bf16.msra.mxu1 %v3407_v38  ;;  %2849 = vmatprep.mubr.msk.f32.mxu1 %vm3261_vm0, %v3262_v1 }
0x1449   :  { %3044 = vmatprep.subr.bf16.mxu1 %v3260_v0 }
0x144c   :  { %3046 = vmatpush3.bf16.msra.mxu1 %v3410_v40 }
0x144d   :  { %3053 = vmatprep.subr.bf16.mxu1 %v3260_v0 }
0x14b8   :  { %v1459_v35 = vpop.permute.xlu1 %1458 }
0x151a   :  { %v1362_v28 = vpop.f32.mrb[12].mxu1 }
0x151b   :  { %v1440_v29 = vadd.f32 %v1436_v6, %v1362_v28  ;;  %v2829_v30 = vpop.f32.mrb[13].mxu1 }
0x151d   :  { %v2521_v31 = vmul.f32 -1.442695, %v1440_v29  ;;  %v1971_v29 = vld [vmem:[#allocation5 + $0x18] sm:$0xff] }
0x151f   :  { %3137 = vpow2.f32 %v2521_v31 }
0x1529   :  { %v3138_v32 = vpop.eup %3137 }
0x152a   :  { %v1444_v33 = vadd.f32 1.0, %v3138_v32 }
0x152c   :  { %3139 = vrcp.f32 %v1444_v33 }
0x1536   :  { %v3140_v34 = vpop.eup %3139 }
0x1537   :  { %v1461_v36 = vmul.f32 %v3140_v34, %v1459_v35  ;;  %v1468_v42 = vsub.f32 1.0, %v3140_v34  ;;  %v1474_v44 = vmul.f32 %v3140_v34, %v3538_v62 }
0x1539   :  { %1463 = vrot.lane.b32.xlu1 %v1461_v36, %s3263_s12 }
0x15ab   :  { %v1464_v37 = vpop.permute.xlu1 %1463 }
0x15ac   :  { %v1466_v39 = vadd.f32 %v1464_v37, %v1362_v28  ;;  %v1970_v28 = vld [vmem:[#allocation5 + $0x10] sm:$0xff] }
0x15ad   :  { %v3620_v31 = vpack.c.bf16 %v1971_v29, %v1970_v28 }
0x15ae   :  { %3141 = vtanh.f32 %v1466_v39 }
0x15b8   :  { %v3142_v41 = vpop.eup %3141 }
0x15b9   :  { %1470 = vrot.lane.b32.xlu0 %v3142_v41, %s3265_s15 }
0x162b   :  { %v1471_v43 = vpop.permute.xlu0 %1470 }
0x162c   :  { %v1473_v45 = vmul.f32 %v1471_v43, %v1468_v42  ;;  %v1887_v43 = vld [vmem:[#allocation2] sm:$0xff] }
0x162e   :  { %v3577_v46 = vadd.f32 %v1474_v44, %v1473_v45  ;;  %v1888_v44 = vld [vmem:[#allocation2 + $0x8] sm:$0xff] }
0x162f   :  { %v3066_v45 = vpack.c.bf16 %v1888_v44, %v1887_v43 }
0x1630   :  { %1488 = vrot.lane.b32.xlu1 %v3577_v46, %s3265_s15 }
0x16a2   :  { %v1489_v47 = vpop.permute.xlu1 %1488 }
0x16a3   :  { %2850 = vmatmul.mubr.msk.f32.vlgmr.msra.gmra.mrb[14].mxu1 %vm160_vm4, %v1489_v47 }
0x16a4   :  { %3055 = vmatpush3.bf16.msra.mxu1 %v3364_v11  ;;  %2873 = vmatprep.mubr.msk.f32.mxu1 %vm3261_vm0, %v3262_v1 }
0x16a5   :  { %3056 = vmatprep.subr.bf16.mxu1 %v3260_v0 }
0x16a8   :  { %3058 = vmatpush3.bf16.msra.mxu1 %v3378_v16 }
0x16a9   :  { %3065 = vmatprep.subr.bf16.mxu1 %v3260_v0 }
0x16ab   :  { %2874 = vmatmul.mubr.msk.f32.vlgmr.msra.gmra.mrb[16].mxu1 %vm160_vm4, %v1489_v47 }
0x16ac   :  { %2897 = vmatprep.mubr.msk.f32.mxu1 %vm3261_vm0, %v3262_v1  ;;  %3067 = vmatpush3.bf16.msra.mxu1 %v3066_v45 }
0x16ad   :  { %3068 = vmatprep.subr.bf16.mxu1 %v3260_v0 }
0x1776   :  { %v1558_v48 = vpop.f32.mrb[14].mxu1 }
0x1777   :  { %v1559_v50 = vadd.f32 %v3437_v49, %v1558_v48  ;;  %v2851_v51 = vpop.f32.mrb[15].mxu1 }
0x1778   :  { %v1890_v51 = vld [vmem:[#allocation2 + $0x18] sm:$0xff] }
0x1779   :  { %1563 = vst [vmem:[#allocation8 + $0x20] sm:$0xff] %v1559_v50  ;;  %1564 = vmax.xlane.f32.xlu0 %v1559_v50 }
0x177e   :  { %v1737_v11 = vpop.f32.mrb[16].mxu1 }
0x177f   :  { %v2875_v52 = vpop.f32.mrb[17].mxu1 }
0x1780   :  { %v3639_v52 = vld [vmem:[%s3712_s2] ss:$0 sm:$0xff] }
0x1806   :  { %v1565_v53 = vpop.xlane.xlu0 %1564 }
0x1807   :  { %vm1566_vm12 = vcmp.eq.f32.partialorder %v1559_v50, %v1565_v53  ;;  %v1889_v50 = vld [vmem:[#allocation2 + $0x10] sm:$0xff]  ;;  %v1891_v53 = vld [vmem:[#allocation2 + $0x20] sm:$0x1] }
0x1808   :  { %v1567_v54 = vsel %vm1566_vm12, %v3360_v3, 128 }
0x1809   :  { %v1569_v16 = vshra.s32 %v1567_v54, 16  ;;  %v1568_v56 = vand.u32 65535, %v1567_v54 }
0x180b   :  { %v1571_v55 = vcvt.s32.f32 %v1569_v16  ;;  %v1570_v58 = vcvt.s32.f32 %v1568_v56 }
0x180d   :  { %1572 = vmin.xlane.f32.xlu1 %v1571_v55 }
0x189a   :  { %v1573_v57 = vpop.xlane.xlu1 %1572 }
0x189b   :  { %vm1574_vm13 = vcmp.eq.f32.partialorder %v1571_v55, %v1573_v57  ;;  %v1579_v61 = vcvt.f32.s32 %v1573_v57 }
0x189c   :  { %v1575_v59 = vsel %vm1574_vm13, %v1570_v58, inf }
0x189d   :  { %1576 = vmin.xlane.f32.xlu0 %v1575_v59  ;;  %v1580_v63 = vshll.u32 %v1579_v61, 16 }
0x18b3   :  { %1754 = vrot.lane.b32.xlu0 %v3374_v15, %s3263_s12 }
0x192a   :  { %v1577_v62 = vpop.xlane.xlu0 %1576 }
0x192b   :  { %v1578_v2 = vcvt.f32.s32 %v1577_v62 }
0x192d   :  { %v1581_v4 = vadd.s32 %v1580_v63, %v1578_v2 }
0x192e   :  { %v1755_v5 = vpop.permute.xlu0 %1754 }
0x192f   :  { %vm1582_vm14 = vcmp.eq.s32.totalorder %v3360_v3, %v1581_v4  ;;  %v1757_v6 = vadd.f32 %v1755_v5, %v1737_v11 }
0x1930   :  { %vm1583_vm15 = vmor %vm1582_vm14, %vm67_vm1 }
0x1931   :  { %1759 = vrot.lane.b32.xlu1 %v1757_v6, %s3263_s12  ;;  %v2525_v8 = vsel %vm1583_vm15, 1.0, %v3262_v1 }
0x1932   :  { %2863 = vmatmul.mubr.msk.f32.vlgmr.msra.gmra.mrb[14].mxu0 %vm78_vm6, %v2525_v8 }
0x1933   :  { %3061 = vmatpush3.bf16.msra.mxu0 %v3407_v38  ;;  %2884 = vmatprep.mubr.msk.f32.mxu0 %vm3261_vm0, %v3262_v1 }
0x1934   :  { %3062 = vmatprep.subr.bf16.mxu0 %v3260_v0 }
0x1937   :  { %3064 = vmatpush3.bf16.msra.mxu0 %v3410_v40 }
0x1938   :  { %3071 = vmatprep.subr.bf16.mxu0 %v3260_v0 }
0x19a3   :  { %v1760_v14 = vpop.permute.xlu1 %1759 }
0x1a05   :  { %v1663_v15 = vpop.f32.mrb[14].mxu0 }
0x1a06   :  { %v1741_v9 = vadd.f32 %v1737_v11, %v1663_v15  ;;  %v2864_v7 = vpop.f32.mrb[15].mxu0  ;;  %v3069_v11 = vpack.c.bf16 %v1890_v51, %v1889_v50 }
0x1a08   :  { %v2529_v10 = vmul.f32 -1.442695, %v1741_v9  ;;  %3070 = vmatpush3.bf16.msra.mxu1 %v3069_v11 }
0x1a09   :  { %2895 = vmatprep.subr.mxu1 %v3262_v1 }
0x1a0a   :  { %3143 = vpow2.f32 %v2529_v10  ;;  %v2078_v10 = vld [vmem:[#allocation7] sm:$0xff] }
0x1a0c   :  { %2896 = vmatpush3.msk.msra.mxu1 %vm82_vm5, %v1891_v53 }
0x1a0d   :  { %3077 = vmatprep.subr.bf16.mxu1 %v3260_v0 }
0x1a14   :  { %v3144_v12 = vpop.eup %3143 }
0x1a15   :  { %v1745_v13 = vadd.f32 1.0, %v3144_v12  ;;  %v2079_v12 = vld [vmem:[#allocation7 + $0x8] sm:$0xff] }
0x1a17   :  { %3145 = vrcp.f32 %v1745_v13  ;;  %v2080_v13 = vld [vmem:[#allocation7 + $0x10] sm:$0xff] }
0x1a21   :  { %v3146_v17 = vpop.eup %3145 }
0x1a22   :  { %v1762_v38 = vmul.f32 %v3146_v17, %v1760_v14  ;;  %v1769_v40 = vsub.f32 1.0, %v3146_v17  ;;  %v1775_v22 = vmul.f32 %v3146_v17, %v3577_v46  ;;  %v3078_v17 = vpack.c.bf16 %v2079_v12, %v2078_v10  ;;  %v2081_v14 = vld [vmem:[#allocation7 + $0x18] sm:$0xff] }
0x1a24   :  { %1764 = vrot.lane.b32.xlu1 %v1762_v38, %s3263_s12  ;;  %v3081_v38 = vpack.c.bf16 %v2081_v14, %v2080_v13 }
0x1a96   :  { %v1765_v18 = vpop.permute.xlu1 %1764 }
0x1a97   :  { %v1767_v19 = vadd.f32 %v1765_v18, %v1663_v15 }
0x1a99   :  { %3147 = vtanh.f32 %v1767_v19 }
0x1aa3   :  { %v3148_v20 = vpop.eup %3147 }
0x1aa4   :  { %1771 = vrot.lane.b32.xlu0 %v3148_v20, %s3265_s15 }
0x1b16   :  { %v1772_v21 = vpop.permute.xlu0 %1771 }
0x1b17   :  { %v1774_v23 = vmul.f32 %v1772_v21, %v1769_v40 }
0x1b19   :  { %v3612_v24 = vadd.f32 %v1775_v22, %v1774_v23 }
0x1b1b   :  { %1789 = vrot.lane.b32.xlu1 %v3612_v24, %s3265_s15 }
0x1b8d   :  { %v1790_v30 = vpop.permute.xlu1 %1789 }
0x1b8e   :  { %2885 = vmatmul.mubr.msk.f32.vlgmr.msra.gmra.mrb[16].mxu0 %vm160_vm4, %v1790_v30 }
0x1b8f   :  { %3073 = vmatpush3.bf16.msra.mxu0 %v3616_v27  ;;  %2908 = vmatprep.mubr.msk.f32.mxu0 %vm3261_vm0, %v3262_v1 }
0x1b90   :  { %3074 = vmatprep.subr.bf16.mxu0 %v3260_v0 }
0x1b93   :  { %3076 = vmatpush3.bf16.msra.mxu0 %v3620_v31 }
0x1b94   :  { %3083 = vmatprep.subr.bf16.mxu0 %v3260_v0 }
0x1b96   :  { %2909 = vmatmul.mubr.msk.f32.vlgmr.msra.gmra.mrb[18].mxu0 %vm160_vm4, %v1790_v30 }
0x1b97   :  { %2932 = vmatprep.mubr.msk.f32.mxu0 %vm3261_vm0, %v3262_v1  ;;  %3085 = vmatpush3.bf16.msra.mxu0 %v3066_v45 }
0x1b98   :  { %3086 = vmatprep.subr.bf16.mxu0 %v3260_v0 }
0x1b9b   :  { %3088 = vmatpush3.bf16.msra.mxu0 %v3069_v11 }
0x1b9c   :  { %2930 = vmatprep.subr.mxu0 %v3262_v1 }
0x1c61   :  { %v1859_v32 = vpop.f32.mrb[16].mxu0 }
0x1c62   :  { %v1860_v33 = vadd.f32 %v3437_v49, %v1859_v32  ;;  %v2886_v34 = vpop.f32.mrb[17].mxu0 }
0x1c64   :  { %1864 = vst [vmem:[#allocation8 + $0x28] sm:$0xff] %v1860_v33  ;;  %1865 = vmax.xlane.f32.xlu0 %v1860_v33 }
0x1c69   :  { %v2038_v35 = vpop.f32.mrb[18].mxu0 }
0x1c6a   :  { %v2910_v36 = vpop.f32.mrb[19].mxu0 }
0x1cf1   :  { %v1866_v37 = vpop.xlane.xlu0 %1865 }
0x1cf2   :  { %vm1867_vm2 = vcmp.eq.f32.partialorder %v1860_v33, %v1866_v37 }
0x1cf3   :  { %v1868_v39 = vsel %vm1867_vm2, %v3360_v3, 128 }
0x1cf4   :  { %v1870_v41 = vshra.s32 %v1868_v39, 16  ;;  %v1869_v49 = vand.u32 65535, %v1868_v39  ;;  %v2192_v39 = vld [vmem:[#allocation2 + $0x20] sm:$0x1] }
0x1cf5   :  { %2931 = vmatpush3.msk.msra.mxu0 %vm82_vm5, %v2192_v39 }
0x1cf6   :  { %v1872_v42 = vcvt.s32.f32 %v1870_v41  ;;  %v1871_v47 = vcvt.s32.f32 %v1869_v49  ;;  %3095 = vmatprep.subr.bf16.mxu0 %v3260_v0 }
0x1cf8   :  { %1873 = vmin.xlane.f32.xlu1 %v1872_v42 }
0x1d85   :  { %v1874_v46 = vpop.xlane.xlu1 %1873 }
0x1d86   :  { %vm1875_vm3 = vcmp.eq.f32.partialorder %v1872_v42, %v1874_v46  ;;  %v1880_v54 = vcvt.f32.s32 %v1874_v46 }
0x1d87   :  { %v1876_v48 = vsel %vm1875_vm3, %v1871_v47, inf }
0x1d88   :  { %1877 = vmin.xlane.f32.xlu0 %v1876_v48  ;;  %v1881_v55 = vshll.u32 %v1880_v54, 16 }
0x1d9e   :  { %2055 = vrot.lane.b32.xlu0 %v3639_v52, %s3263_s12 }
0x1e15   :  { %v1878_v16 = vpop.xlane.xlu0 %1877 }
0x1e16   :  { %v1879_v56 = vcvt.f32.s32 %v1878_v16 }
0x1e18   :  { %v1882_v57 = vadd.s32 %v1881_v55, %v1879_v56 }
0x1e19   :  { %v2056_v58 = vpop.permute.xlu0 %2055 }
0x1e1a   :  { %vm1883_vm7 = vcmp.eq.s32.totalorder %v3360_v3, %v1882_v57  ;;  %v2058_v59 = vadd.f32 %v2056_v58, %v2038_v35 }
0x1e1b   :  { %vm1884_vm8 = vmor %vm1883_vm7, %vm67_vm1 }
0x1e1c   :  { %2060 = vrot.lane.b32.xlu1 %v2058_v59, %s3263_s12  ;;  %v2533_v60 = vsel %vm1884_vm8, 1.0, %v3262_v1 }
0x1e1d   :  { %2898 = vmatmul.mubr.msk.f32.vlgmr.msra.gmra.mrb[18].mxu1 %vm78_vm6, %v2533_v60 }
0x1e1e   :  { %2919 = vmatprep.mubr.msk.f32.mxu1 %vm3261_vm0, %v3262_v1  ;;  %3079 = vmatpush3.bf16.msra.mxu1 %v3078_v17 }
0x1e1f   :  { %3080 = vmatprep.subr.bf16.mxu1 %v3260_v0 }
0x1e22   :  { %3082 = vmatpush3.bf16.msra.mxu1 %v3081_v38 }
0x1e23   :  { %3089 = vmatprep.subr.bf16.mxu1 %v3260_v0 }
0x1e8e   :  { %v2061_v8 = vpop.permute.xlu1 %2060 }
0x1ef0   :  { %v1964_v61 = vpop.f32.mrb[18].mxu1 }
0x1ef1   :  { %v2042_v62 = vadd.f32 %v2038_v35, %v1964_v61  ;;  %v2899_v63 = vpop.f32.mrb[19].mxu1 }
0x1ef3   :  { %v2537_v2 = vmul.f32 -1.442695, %v2042_v62 }
0x1ef5   :  { %3149 = vpow2.f32 %v2537_v2 }
0x1eff   :  { %v3150_v4 = vpop.eup %3149 }
0x1f00   :  { %v2046_v5 = vadd.f32 1.0, %v3150_v4 }
0x1f02   :  { %3151 = vrcp.f32 %v2046_v5 }
0x1f0c   :  { %v3152_v6 = vpop.eup %3151 }
0x1f0d   :  { %v2063_v15 = vmul.f32 %v3152_v6, %v2061_v8  ;;  %v2070_v19 = vsub.f32 1.0, %v3152_v6  ;;  %v2076_v40 = vmul.f32 %v3152_v6, %v3612_v24  ;;  %v3672_v24 = vld [vmem:[%s3714_s4] ss:$0 sm:$0xff]  ;;  %s3266_s4 = smov [#allocation8]  }
0x1f0e   :  { %s2472_s1 = sshll.u32 %s3266_s4, 4  ;;  %s2473_s1 = int_to_ptr.vmem [resolvable:$true] %s2472_s1 }
0x1f0f   :  { %2065 = vrot.lane.b32.xlu1 %v2063_v15, %s3263_s12  ;;  %s3227_s21 = scalar_lea.vmem %s2473_s1, 1024  ;;  %p3232_p11 = scmp.lt.s32.totalorder %s2473_s1, %s2473_s1 }
0x1f10   :  { %p3228_p10 = scmp.ne.s32.totalorder %s2473_s1, %s3227_s21  ;;  %p3233_p12 = scmp.lt.s32.totalorder %s3227_s21, %s3227_s21 }
0x1f12   :  { %p3234_p13 = por %p3233_p12, %p3232_p11 }
0x1f14   :  { %p3235_p0 = pnand %p3234_p13, %p3228_p10 }
0x1f81   :  { %v2066_v9 = vpop.permute.xlu1 %2065 }
0x1f82   :  { %v2068_v7 = vadd.f32 %v2066_v9, %v1964_v61 }
0x1f84   :  { %3153 = vtanh.f32 %v2068_v7 }
0x1f8e   :  { %v3154_v18 = vpop.eup %3153 }
0x1f8f   :  { %2072 = vrot.lane.b32.xlu0 %v3154_v18, %s3265_s15 }
0x2001   :  { %v2073_v20 = vpop.permute.xlu0 %2072 }
0x2002   :  { %v2075_v21 = vmul.f32 %v2073_v20, %v2070_v19 }
0x2004   :  { %v3658_v22 = vadd.f32 %v2076_v40, %v2075_v21 }
0x2006   :  { %2090 = vrot.lane.b32.xlu1 %v3658_v22, %s3265_s15 }
0x2078   :  { %v2091_v23 = vpop.permute.xlu1 %2090 }
0x2079   :  { %2920 = vmatmul.mubr.msk.f32.vlgmr.msra.gmra.mrb[20].mxu1 %vm160_vm4, %v2091_v23 }
0x207a   :  { %3091 = vmatpush3.bf16.msra.mxu1 %v3616_v27  ;;  %2943 = vmatprep.mubr.msk.f32.mxu1 %vm3261_vm0, %v3262_v1 }
0x207b   :  { %3092 = vmatprep.subr.bf16.mxu1 %v3260_v0 }
0x207e   :  { %3094 = vmatpush3.bf16.msra.mxu1 %v3620_v31 }
0x2081   :  { %2944 = vmatmul.mubr.msk.f32.vlgmr.msra.gmra.mrb[22].mxu1 %vm160_vm4, %v2091_v23 }
0x214c   :  { %v2160_v25 = vpop.f32.mrb[20].mxu1 }
0x214d   :  { %v2161_v26 = vadd.f32 %v3672_v24, %v2160_v25  ;;  %v2921_v28 = vpop.f32.mrb[21].mxu1 }
0x214f   :  { %2165 = vst [vmem:[#allocation8 + $0x30] sm:$0xff] %v2161_v26  ;;  %2166 = vmax.xlane.f32.xlu0 %v2161_v26 }
0x2154   :  { %v2339_v27 = vpop.f32.mrb[22].mxu1 }
0x2155   :  { %v2945_v29 = vpop.f32.mrb[23].mxu1 }
0x21dc   :  { %v2167_v30 = vpop.xlane.xlu0 %2166 }
0x21dd   :  { %vm2168_vm9 = vcmp.eq.f32.partialorder %v2161_v26, %v2167_v30 }
0x21de   :  { %v2169_v32 = vsel %vm2168_vm9, %v3360_v3, 128 }
0x21df   :  { %v2171_v31 = vshra.s32 %v2169_v32, 16  ;;  %v2170_v34 = vand.u32 65535, %v2169_v32 }
0x21e1   :  { %v2173_v33 = vcvt.s32.f32 %v2171_v31  ;;  %v2172_v36 = vcvt.s32.f32 %v2170_v34 }
0x21e3   :  { %2174 = vmin.xlane.f32.xlu1 %v2173_v33 }
0x2270   :  { %v2175_v35 = vpop.xlane.xlu1 %2174 }
0x2271   :  { %vm2176_vm10 = vcmp.eq.f32.partialorder %v2173_v33, %v2175_v35  ;;  %v2181_v41 = vcvt.f32.s32 %v2175_v35 }
0x2272   :  { %v2177_v37 = vsel %vm2176_vm10, %v2172_v36, inf }
0x2273   :  { %2178 = vmin.xlane.f32.xlu0 %v2177_v37  ;;  %v2182_v43 = vshll.u32 %v2181_v41, 16 }
0x2289   :  { %2356 = vrot.lane.b32.xlu0 %v3639_v52, %s3263_s12 }
0x2300   :  { %v2179_v42 = vpop.xlane.xlu0 %2178 }
0x2301   :  { %v2180_v44 = vcvt.f32.s32 %v2179_v42 }
0x2303   :  { %v2183_v45 = vadd.s32 %v2182_v43, %v2180_v44 }
0x2304   :  { %v2357_v49 = vpop.permute.xlu0 %2356 }
0x2305   :  { %vm2184_vm11 = vcmp.eq.s32.totalorder %v3360_v3, %v2183_v45  ;;  %v2359_v46 = vadd.f32 %v2357_v49, %v2339_v27 }
0x2306   :  { %vm2185_vm12 = vmor %vm2184_vm11, %vm67_vm1 }
0x2307   :  { %2361 = vrot.lane.b32.xlu1 %v2359_v46, %s3263_s12  ;;  %v2541_v47 = vsel %vm2185_vm12, 1.0, %v3262_v1 }
0x2308   :  { %2933 = vmatmul.mubr.msk.f32.vlgmr.msra.gmra.mrb[20].mxu0 %vm78_vm6, %v2541_v47 }
0x2309   :  { %3097 = vmatpush3.bf16.msra.mxu0 %v3078_v17  ;;  %2954 = vmatprep.mubr.msk.f32.mxu0 %vm3261_vm0, %v3262_v1 }
0x230a   :  { %3098 = vmatprep.subr.bf16.mxu0 %v3260_v0 }
0x230d   :  { %3100 = vmatpush3.bf16.msra.mxu0 %v3081_v38 }
0x2379   :  { %v2362_v54 = vpop.permute.xlu1 %2361 }
0x23db   :  { %v2265_v48 = vpop.f32.mrb[20].mxu0 }
0x23dc   :  { %v2343_v50 = vadd.f32 %v2339_v27, %v2265_v48  ;;  %v2934_v51 = vpop.f32.mrb[21].mxu0 }
0x23de   :  { %v2545_v11 = vmul.f32 -1.442695, %v2343_v50 }
0x23e0   :  { %3155 = vpow2.f32 %v2545_v11 }
0x23ea   :  { %v3156_v3 = vpop.eup %3155 }
0x23eb   :  { %v2347_v52 = vadd.f32 1.0, %v3156_v3 }
0x23ed   :  { %3157 = vrcp.f32 %v2347_v52 }
0x23f7   :  { %v3158_v53 = vpop.eup %3157 }
0x23f8   :  { %v2364_v16 = vmul.f32 %v3158_v53, %v2362_v54  ;;  %v2371_v0 = vsub.f32 1.0, %v3158_v53  ;;  %v2377_v58 = vmul.f32 %v3158_v53, %v3658_v22 }
0x23fa   :  { %2366 = vrot.lane.b32.xlu1 %v2364_v16, %s3263_s12 }
0x246c   :  { %v2367_v55 = vpop.permute.xlu1 %2366 }
0x246d   :  { %v2369_v56 = vadd.f32 %v2367_v55, %v2265_v48 }
0x246f   :  { %3159 = vtanh.f32 %v2369_v56 }
0x2479   :  { %v3160_v1 = vpop.eup %3159 }
0x247a   :  { %2373 = vrot.lane.b32.xlu0 %v3160_v1, %s3265_s15 }
0x24ec   :  { %v2374_v57 = vpop.permute.xlu0 %2373 }
0x24ed   :  { %v2376_v59 = vmul.f32 %v2374_v57, %v2371_v0 }
0x24ef   :  { %v2378_v60 = vadd.f32 %v2377_v58, %v2376_v59 }
0x24f1   :  { %2391 = vrot.lane.b32.xlu1 %v2378_v60, %s3265_s15 }
0x2563   :  { %v2392_v61 = vpop.permute.xlu1 %2391 }
0x2564   :  { %2955 = vmatmul.mubr.msk.f32.vlgmr.msra.gmra.mrb[22].mxu0 %vm160_vm4, %v2392_v61 }
0x2637   :  { %v2461_v62 = vpop.f32.mrb[22].mxu0 }
0x2638   :  { %v2462_v63 = vadd.f32 %v3672_v24, %v2461_v62  ;;  %v2956_v2 = vpop.f32.mrb[23].mxu0 }
0x263a   :  { %2466 = vst [vmem:[#allocation8 + $0x38] sm:$0xff] %v2462_v63 }
0x263b   :  { %3238 = shalt.err (!%p3235_p0)
}
0x263c   :  { %s3239_s25 = scalar_lea.hbm %s3716_s6, 1024 }
0x263d   :  { %p3240_p1 = scmp.ne.s32.totalorder %s3716_s6, %s3239_s25  ;;  %p3243_p2 = scmp.lt.u32.totalorder %s3239_s25, %s3716_s6 }
0x263f   :  { %p3245_p3 = pnand %p3243_p2, %p3240_p1 }
0x2641   :  { %3248 = shalt.err (!%p3245_p3)
}
0x2642   :  { %2478 = dma.vmem_to_hbm [thread:$0]  %s2473_s1, 1024, %s3716_s6, [#allocation4], %s3257_s9, %s3257_s9, %s3258_s10  }
0x2643   :  { %3253 = dma.done.wait [#allocation4], 1024  }
0x2644   :  { %3254 = vsyncadd [#allocation4], 4294966272 }
0x2645   :  { %2482 = vsyncpa [#allocation3], 1 }
0x2646   :  { %2483 = vsyncpa [#allocation6], 1 }
0x2647   :  { %2484 = vsyncpa [#allocation4], 1 }

</bundles_post_ra>
